<compile_context>
chip_gen: v6e
topology: v6e:2x2x1
jax: 0.10.0
libtpu: 0.0.40
codegen_flags: <defaults>
</compile_context>

<pallas_src>
import functools

import jax
import jax.numpy as jnp
import numpy as np
from jax import lax
from jax.experimental import pallas as pl
from jax.experimental.pallas import tpu as pltpu


def df_kernel(t_ref, x_ref, mask_ref, w1a_ref, w2m_ref, b2_ref, timg_ref,
              w3m_ref, w3t_ref, b3_ref, out_ref, *, W):
    N = x_ref.shape[1]                         # B * H * W, lane axis
    t = t_ref[0]                               # SMEM scalar

    # ---- fc1: 1x1 conv; bias and t-channel folded into the matmul ----------
    x_aug = jnp.concatenate(
        [x_ref[...],
         jnp.full((1, N), t, jnp.float32),     # t channel
         jnp.ones((1, N), jnp.float32)],       # bias row
        axis=0)                                # (C+2, N)
    h1 = jnp.dot(w1a_ref[...], x_aug, preferred_element_type=jnp.float32)
    h1 = jnp.maximum(h1, 0.0)                  # (NH, N)

    # ---- fc2: 3x3 conv (pad=1) as ONE im2col matmul, K = 9*NH ---------------
    # shifted[:, g] = h1[:, g + dy*W + dx]; batch-boundary / image-border pulls
    # are zeroed by the precomputed per-batch border masks.
    mask = mask_ref[...]                       # (9, N)
    cols = []
    for k in range(9):
        dy, dx = k // 3 - 1, k % 3 - 1
        if dy == 0 and dx == 0:
            cols.append(h1)                    # center tap: no shift/mask
        else:
            d = dy * W + dx
            shifted = pltpu.roll(h1, (-d) % N, axis=1)
            cols.append(shifted * mask[k:k + 1, :])
    col = jnp.concatenate(cols, axis=0)        # (9*NH, N)
    h2 = jnp.dot(w2m_ref[...], col, preferred_element_type=jnp.float32)
    h2 = jnp.maximum(h2 + b2_ref[...] + t * timg_ref[...], 0.0)   # (NH, N)

    # ---- fc3: 1x1 conv, t-channel folded as per-row FMA ---------------------
    h3 = jnp.dot(w3m_ref[...], h2, preferred_element_type=jnp.float32)
    out_ref[...] = (h3 + b3_ref[...] + t * w3t_ref[...]).astype(out_ref.dtype)


def precompute(params, B, C, H, W):
    """t-independent parameter repack. Call ONCE; reuse across all ODE steps."""
    w1, b1, w2, b2, w3, b3 = params
    NH = w1.shape[0]
    P = H * W

    # fc1: [weights | t-channel column | bias column]  ->  (NH, C+2)
    w1m = w1[:, :C, 0, 0]
    w1t = w1[:, C, 0, 0][:, None]
    w1a = jnp.concatenate([w1m, w1t, b1[:, None]], axis=1).astype(jnp.float32)

    # fc2 im2col weights: w2m[o, (ky*3+kx)*NH + i] = w2[o, i, ky, kx]
    w2m = jnp.transpose(w2[:, :NH, :, :], (0, 2, 3, 1)).reshape(NH, 9 * NH)
    w2m = w2m.astype(jnp.float32)
    w2t = w2[:, NH, :, :].reshape(NH, 9).astype(jnp.float32)      # (NH, 9)
    b2c = b2.astype(jnp.float32)[:, None]                         # (NH, 1)

    # fc3
    w3m = w3[:, :NH, 0, 0].astype(jnp.float32)                    # (C, NH)
    w3t = w3[:, NH, 0, 0].astype(jnp.float32)[:, None]            # (C, 1)
    b3c = b3.astype(jnp.float32)[:, None]                         # (C, 1)

    # 9-tap border-validity mask (encodes the zero padding), tiled over batch.
    yy = np.arange(H)[:, None]
    xx = np.arange(W)[None, :]
    rows = []
    for k in range(9):
        dy, dx = k // 3 - 1, k % 3 - 1
        m = ((yy + dy >= 0) & (yy + dy < H) & (xx + dx >= 0) & (xx + dx < W))
        rows.append(m.reshape(-1))
    mask_img = jnp.asarray(np.stack(rows, axis=0), jnp.float32)   # (9, P)
    mask = jnp.tile(mask_img, (1, B))                             # (9, B*P)

    # per-unit-t contribution of fc2's zero-padded t channel, tiled over batch
    timg = jnp.tile(jnp.dot(w2t, mask_img), (1, B))               # (NH, B*P)

    return dict(w1a=w1a, w2m=w2m, b2=b2c, timg=timg,
                w3m=w3m, w3t=w3t, b3=b3c, mask=mask)


def df_forward(t, x0, prep):
    """x0: (B, 1, C, H, W) ODE state; prep: output of precompute()."""
    B, D, C, H, W = x0.shape
    P = H * W
    N = B * P
    NH = prep["w1a"].shape[0]

    # 'b d c x y -> b (d c) x y' (d=1), then lanes ordered (batch-major, pixel)
    x = jnp.transpose(x0.reshape(B, C, P), (1, 0, 2)).reshape(C, N)
    x = x.astype(jnp.float32)
    t_arr = jnp.asarray(t, jnp.float32).reshape(1)

    flops = 2 * N * (NH * (C + 2) + NH * (9 * NH) + C * NH)
    bytes_accessed = 4 * (C * N + 9 * N + NH * (C + 2) + NH * 9 * NH
                          + NH + NH * N + C * NH + 2 * C + C * N)

    vmem = pl.BlockSpec(memory_space=pltpu.MemorySpace.VMEM)
    out = pl.pallas_call(
        functools.partial(df_kernel, W=W),
        out_shape=jax.ShapeDtypeStruct((C, N), jnp.float32),
        in_specs=[
            pl.BlockSpec(memory_space=pltpu.MemorySpace.SMEM),   # t scalar
            vmem,                                                # x (C, N)
            vmem,                                                # border mask (9, N)
            vmem,                                                # fc1 weight+t+bias (NH, C+2)
            vmem,                                                # fc2 im2col weight (NH, 9*NH)
            vmem,                                                # fc2 bias (NH, 1)
            vmem,                                                # fc2 t-image (NH, N)
            vmem,                                                # fc3 weight (C, NH)
            vmem,                                                # fc3 t-column (C, 1)
            vmem,                                                # fc3 bias (C, 1)
        ],
        out_specs=vmem,
        cost_estimate=pl.CostEstimate(flops=flops, transcendentals=0,
                                      bytes_accessed=bytes_accessed),
    )(t_arr, x, prep["mask"], prep["w1a"], prep["w2m"], prep["b2"],
      prep["timg"], prep["w3m"], prep["w3t"], prep["b3"])

    out = jnp.transpose(out.reshape(C, B, P), (1, 0, 2)).reshape(B, C, H, W)
    return out[:, None]                                           # (B, 1, C, H, W)


def df_reference(t, x0, params):
    """Pure-JAX reference mirroring the PyTorch forward (args.model='node')."""
    w1, b1, w2, b2, w3, b3 = params
    B, D, C, H, W = x0.shape
    out = x0.reshape(B, D * C, H, W)
    t_img = jnp.full((B, 1, H, W), t, jnp.float32)

    def conv(x, w, b, pad):
        y = lax.conv_general_dilated(
            x, w, (1, 1), [(pad, pad), (pad, pad)],
            dimension_numbers=('NCHW', 'OIHW', 'NCHW'))
        return y + b[None, :, None, None]

    h = jnp.concatenate([out, t_img], axis=1)
    h = jax.nn.relu(conv(h, w1, b1, 0))
    h = jnp.concatenate([h, t_img], axis=1)
    h = jax.nn.relu(conv(h, w2, b2, 1))
    h = jnp.concatenate([h, t_img], axis=1)
    h = conv(h, w3, b3, 0)
    return h[:, None]                                             # (B, 1, C, H, W)


if __name__ == "__main__":
    key = jax.random.PRNGKey(0)
    B, C, NH, H, W = 2, 4, 32, 16, 16                # in_channels=4, nhidden=32
    ks = jax.random.split(key, 7)
    x0 = jax.random.normal(ks[0], (B, 1, C, H, W), jnp.float32)
    t = 0.5

    # deterministic synthetic parameters (PyTorch Conv2d OIHW shapes)
    w1 = 0.1 * jax.random.normal(ks[1], (NH, C + 1, 1, 1), jnp.float32)
    b1 = 0.1 * jax.random.normal(ks[2], (NH,), jnp.float32)
    w2 = 0.1 * jax.random.normal(ks[3], (NH, NH + 1, 3, 3), jnp.float32)
    b2 = 0.1 * jax.random.normal(ks[4], (NH,), jnp.float32)
    w3 = 0.1 * jax.random.normal(ks[5], (C, NH + 1, 1, 1), jnp.float32)
    b3 = 0.1 * jax.random.normal(ks[6], (C,), jnp.float32)
    params = (w1, b1, w2, b2, w3, b3)

    prep = jax.tree_util.tree_map(jax.block_until_ready,
                                  precompute(params, B, C, H, W))  # once, t-independent

    out = jax.block_until_ready(df_forward(t, x0, prep))
    ref = jax.block_until_ready(df_reference(t, x0, params))
    assert out.shape == (B, 1, C, H, W)
    np.testing.assert_allclose(np.asarray(out), np.asarray(ref),
                               atol=1e-4, rtol=1e-4)
    print("KERNEL_OK")
</pallas_src>

<mosaic_0001>
module attributes {stable_mosaic.version = 11 : i64} {
  func.func @df_kernel(%arg0: memref<1xf32, #tpu.memory_space<smem>>, %arg1: memref<4x512xf32, #tpu.memory_space<vmem>>, %arg2: memref<9x512xf32, #tpu.memory_space<vmem>>, %arg3: memref<32x6xf32, #tpu.memory_space<vmem>>, %arg4: memref<32x288xf32, #tpu.memory_space<vmem>>, %arg5: memref<32x1xf32, #tpu.memory_space<vmem>>, %arg6: memref<32x512xf32, #tpu.memory_space<vmem>>, %arg7: memref<4x32xf32, #tpu.memory_space<vmem>>, %arg8: memref<4x1xf32, #tpu.memory_space<vmem>>, %arg9: memref<4x1xf32, #tpu.memory_space<vmem>>, %arg10: memref<4x512xf32, #tpu.memory_space<vmem>>) attributes {dimension_semantics = [], scalar_prefetch = 0 : i64, scratch_operands = 0 : i64, tpu.core_type = #tpu.core_type<tc>} {
    %c0 = arith.constant 0 : index
    %0 = memref.load %arg0[%c0] : memref<1xf32, #tpu.memory_space<smem>>
    %c0_0 = arith.constant 0 : index
    %c0_1 = arith.constant 0 : index
    %1 = vector.load %arg1[%c0_0, %c0_1] : memref<4x512xf32, #tpu.memory_space<vmem>>, vector<4x512xf32>
    %2 = vector.broadcast %0 : f32 to vector<1x512xf32>
    %cst = arith.constant 1.000000e+00 : f32
    %3 = vector.broadcast %cst : f32 to vector<1x512xf32>
    %4 = tpu.concatenate %1, %2, %3 in 0 : vector<4x512xf32>, vector<1x512xf32>, vector<1x512xf32> -> vector<6x512xf32>
    %c0_2 = arith.constant 0 : index
    %c0_3 = arith.constant 0 : index
    %5 = vector.load %arg3[%c0_2, %c0_3] : memref<32x6xf32, #tpu.memory_space<vmem>>, vector<32x6xf32>
    %cst_4 = arith.constant dense<0.000000e+00> : vector<32x512xf32>
    %6 = tpu.matmul %5, %4, %cst_4 {dimension_numbers = #tpu.dot_dimension_numbers<[1], [0], [0], [1], [0, 0, 1, 1], [], []>} : vector<32x6xf32>, vector<6x512xf32>, vector<32x512xf32> -> vector<32x512xf32>
    %cst_5 = arith.constant 0.000000e+00 : f32
    %7 = vector.broadcast %cst_5 : f32 to vector<32x512xf32>
    %8 = arith.maximumf %6, %7 : vector<32x512xf32>
    %c0_6 = arith.constant 0 : index
    %c0_7 = arith.constant 0 : index
    %9 = vector.load %arg2[%c0_6, %c0_7] : memref<9x512xf32, #tpu.memory_space<vmem>>, vector<9x512xf32>
    %c17_i32 = arith.constant 17 : i32
    %10 = tpu.dynamic_rotate %8 by %c17_i32 dim 1 : vector<32x512xf32>, i32 -> vector<32x512xf32>
    %11 = vector.extract_strided_slice %9 {offsets = [0, 0], sizes = [1, 512], strides = [1, 1]} : vector<9x512xf32> to vector<1x512xf32>
    %12 = vector.broadcast %11 : vector<1x512xf32> to vector<32x512xf32>
    %13 = arith.mulf %10, %12 : vector<32x512xf32>
    %c16_i32 = arith.constant 16 : i32
    %14 = tpu.dynamic_rotate %8 by %c16_i32 dim 1 : vector<32x512xf32>, i32 -> vector<32x512xf32>
    %15 = vector.extract_strided_slice %9 {offsets = [1, 0], sizes = [1, 512], strides = [1, 1]} : vector<9x512xf32> to vector<1x512xf32>
    %16 = vector.broadcast %15 : vector<1x512xf32> to vector<32x512xf32>
    %17 = arith.mulf %14, %16 : vector<32x512xf32>
    %c15_i32 = arith.constant 15 : i32
    %18 = tpu.dynamic_rotate %8 by %c15_i32 dim 1 : vector<32x512xf32>, i32 -> vector<32x512xf32>
    %19 = vector.extract_strided_slice %9 {offsets = [2, 0], sizes = [1, 512], strides = [1, 1]} : vector<9x512xf32> to vector<1x512xf32>
    %20 = vector.broadcast %19 : vector<1x512xf32> to vector<32x512xf32>
    %21 = arith.mulf %18, %20 : vector<32x512xf32>
    %c1_i32 = arith.constant 1 : i32
    %22 = tpu.dynamic_rotate %8 by %c1_i32 dim 1 : vector<32x512xf32>, i32 -> vector<32x512xf32>
    %23 = vector.extract_strided_slice %9 {offsets = [3, 0], sizes = [1, 512], strides = [1, 1]} : vector<9x512xf32> to vector<1x512xf32>
    %24 = vector.broadcast %23 : vector<1x512xf32> to vector<32x512xf32>
    %25 = arith.mulf %22, %24 : vector<32x512xf32>
    %c511_i32 = arith.constant 511 : i32
    %26 = tpu.dynamic_rotate %8 by %c511_i32 dim 1 : vector<32x512xf32>, i32 -> vector<32x512xf32>
    %27 = vector.extract_strided_slice %9 {offsets = [5, 0], sizes = [1, 512], strides = [1, 1]} : vector<9x512xf32> to vector<1x512xf32>
    %28 = vector.broadcast %27 : vector<1x512xf32> to vector<32x512xf32>
    %29 = arith.mulf %26, %28 : vector<32x512xf32>
    %c497_i32 = arith.constant 497 : i32
    %30 = tpu.dynamic_rotate %8 by %c497_i32 dim 1 : vector<32x512xf32>, i32 -> vector<32x512xf32>
    %31 = vector.extract_strided_slice %9 {offsets = [6, 0], sizes = [1, 512], strides = [1, 1]} : vector<9x512xf32> to vector<1x512xf32>
    %32 = vector.broadcast %31 : vector<1x512xf32> to vector<32x512xf32>
    %33 = arith.mulf %30, %32 : vector<32x512xf32>
    %c496_i32 = arith.constant 496 : i32
    %34 = tpu.dynamic_rotate %8 by %c496_i32 dim 1 : vector<32x512xf32>, i32 -> vector<32x512xf32>
    %35 = vector.extract_strided_slice %9 {offsets = [7, 0], sizes = [1, 512], strides = [1, 1]} : vector<9x512xf32> to vector<1x512xf32>
    %36 = vector.broadcast %35 : vector<1x512xf32> to vector<32x512xf32>
    %37 = arith.mulf %34, %36 : vector<32x512xf32>
    %c495_i32 = arith.constant 495 : i32
    %38 = tpu.dynamic_rotate %8 by %c495_i32 dim 1 : vector<32x512xf32>, i32 -> vector<32x512xf32>
    %39 = vector.extract_strided_slice %9 {offsets = [8, 0], sizes = [1, 512], strides = [1, 1]} : vector<9x512xf32> to vector<1x512xf32>
    %40 = vector.broadcast %39 : vector<1x512xf32> to vector<32x512xf32>
    %41 = arith.mulf %38, %40 : vector<32x512xf32>
    %42 = tpu.concatenate %13, %17, %21, %25, %8, %29, %33, %37, %41 in 0 : vector<32x512xf32>, vector<32x512xf32>, vector<32x512xf32>, vector<32x512xf32>, vector<32x512xf32>, vector<32x512xf32>, vector<32x512xf32>, vector<32x512xf32>, vector<32x512xf32> -> vector<288x512xf32>
    %c0_8 = arith.constant 0 : index
    %c0_9 = arith.constant 0 : index
    %43 = vector.load %arg4[%c0_8, %c0_9] : memref<32x288xf32, #tpu.memory_space<vmem>>, vector<32x288xf32>
    %cst_10 = arith.constant dense<0.000000e+00> : vector<32x512xf32>
    %44 = tpu.matmul %43, %42, %cst_10 {dimension_numbers = #tpu.dot_dimension_numbers<[1], [0], [0], [1], [0, 0, 1, 1], [], []>} : vector<32x288xf32>, vector<288x512xf32>, vector<32x512xf32> -> vector<32x512xf32>
    %c0_11 = arith.constant 0 : index
    %c0_12 = arith.constant 0 : index
    %45 = vector.load %arg5[%c0_11, %c0_12] : memref<32x1xf32, #tpu.memory_space<vmem>>, vector<32x1xf32>
    %46 = vector.broadcast %45 : vector<32x1xf32> to vector<32x512xf32>
    %47 = arith.addf %44, %46 : vector<32x512xf32>
    %c0_13 = arith.constant 0 : index
    %c0_14 = arith.constant 0 : index
    %48 = vector.load %arg6[%c0_13, %c0_14] : memref<32x512xf32, #tpu.memory_space<vmem>>, vector<32x512xf32>
    %49 = vector.broadcast %0 : f32 to vector<32x512xf32>
    %50 = arith.mulf %49, %48 : vector<32x512xf32>
    %51 = arith.addf %47, %50 : vector<32x512xf32>
    %cst_15 = arith.constant 0.000000e+00 : f32
    %52 = vector.broadcast %cst_15 : f32 to vector<32x512xf32>
    %53 = arith.maximumf %51, %52 : vector<32x512xf32>
    %c0_16 = arith.constant 0 : index
    %c0_17 = arith.constant 0 : index
    %54 = vector.load %arg7[%c0_16, %c0_17] : memref<4x32xf32, #tpu.memory_space<vmem>>, vector<4x32xf32>
    %cst_18 = arith.constant dense<0.000000e+00> : vector<4x512xf32>
    %55 = tpu.matmul %54, %53, %cst_18 {dimension_numbers = #tpu.dot_dimension_numbers<[1], [0], [0], [1], [0, 0, 1, 1], [], []>} : vector<4x32xf32>, vector<32x512xf32>, vector<4x512xf32> -> vector<4x512xf32>
    %c0_19 = arith.constant 0 : index
    %c0_20 = arith.constant 0 : index
    %56 = vector.load %arg9[%c0_19, %c0_20] : memref<4x1xf32, #tpu.memory_space<vmem>>, vector<4x1xf32>
    %57 = vector.broadcast %56 : vector<4x1xf32> to vector<4x512xf32>
    %58 = arith.addf %55, %57 : vector<4x512xf32>
    %c0_21 = arith.constant 0 : index
    %c0_22 = arith.constant 0 : index
    %59 = vector.load %arg8[%c0_21, %c0_22] : memref<4x1xf32, #tpu.memory_space<vmem>>, vector<4x1xf32>
    %60 = vector.broadcast %0 : f32 to vector<4x1xf32>
    %61 = arith.mulf %60, %59 : vector<4x1xf32>
    %62 = vector.broadcast %61 : vector<4x1xf32> to vector<4x512xf32>
    %63 = arith.addf %58, %62 : vector<4x512xf32>
    %c0_23 = arith.constant 0 : index
    %c0_24 = arith.constant 0 : index
    %64 = vector.load %arg10[%c0_23, %c0_24] : memref<4x512xf32, #tpu.memory_space<vmem>>, vector<4x512xf32>
    tpu.vector_store %arg10[%c0_23, %c0_24], %63 {strides = array<i32>} : memref<4x512xf32, #tpu.memory_space<vmem>>, vector<4x512xf32>,
    return
  }
}

</mosaic_0001>

<bundles_post_ra>
// kernel: tpu_custom_call.1
= control target key start
LH: loop header
LB: loop body
LE: loop exit
PB: predicated region body
PF: predicated region fallthrough
CT: control target
= control target key end

     0   :  { %16 = vsyncpa [#allocation4], 0  ;;  %s3273_s0 = inlined_call_operand.<no memory space> [shape: f32[1], index: 0, kind: input, shape index: {}]   ;;  %s3274_s1 = inlined_call_operand.vmem [shape: f32[4,512], index: 1, kind: input, shape index: {}]   ;;  %s3275_s2 = inlined_call_operand.vmem [shape: f32[9,512], index: 2, kind: input, shape index: {}]   ;;  %s3276_s3 = inlined_call_operand.vmem [shape: f32[32,6], index: 3, kind: input, shape index: {}]   ;;  %s3277_s4 = inlined_call_operand.hbm [shape: f32[32,288], index: 4, kind: input, shape index: {}]   ;;  %s3278_s5 = inlined_call_operand.vmem [shape: f32[32,1], index: 5, kind: input, shape index: {}]   ;;  %s3279_s6 = inlined_call_operand.hbm [shape: f32[32,512], index: 6, kind: input, shape index: {}]   ;;  %s3280_s7 = inlined_call_operand.vmem [shape: f32[4,32], index: 7, kind: input, shape index: {}]   ;;  %s3281_s8 = inlined_call_operand.vmem [shape: f32[4,1], index: 8, kind: input, shape index: {}]   ;;  %s3282_s9 = inlined_call_operand.vmem [shape: f32[4,1], index: 9, kind: input, shape index: {}]   ;;  %s3283_s10 = inlined_call_operand.hbm [shape: f32[4,512], index: 10, kind: output, shape index: {}]  }
   0x1   :  { %17 = vsyncpa [#allocation7], 0 }
   0x2   :  { %18 = vsyncpa [#allocation5], 0  ;;  %s1739_s13 = smov [#allocation3]  }
   0x3   :  { %s32_s14 = sshll.u32 %s1739_s13, 4  ;;  %s33_s14 = int_to_ptr.vmem [resolvable:$true] %s32_s14 }
   0x4   :  { %s1681_s15 = scalar_lea.vmem %s33_s14, 1536  ;;  %p1686_p1 = scmp.lt.s32.totalorder %s33_s14, %s33_s14 }
   0x5   :  { %p1682_p0 = scmp.ne.s32.totalorder %s33_s14, %s1681_s15  ;;  %p1687_p2 = scmp.lt.s32.totalorder %s1681_s15, %s1681_s15 }
   0x7   :  { %p1688_p3 = por %p1687_p2, %p1686_p1 }
   0x9   :  { %p1689_p4 = pnand %p1688_p3, %p1682_p0 }
   0xb   :  { %1692 = shalt.err (!%p1689_p4)
}
   0xc   :  { %s1740_s16 = smov 384   ;;  %s1741_s17 = smov 24  }
   0xd   :  { %38 = dma.hbm_to_vmem [thread:$0]  %s3277_s4, 1536, %s33_s14, [#allocation4], %s1740_s16, %s1740_s16, %s1741_s17  }
   0xe   :  { %s1742_s20 = smov [#allocation6]  }
   0xf   :  { %s46_s21 = sshll.u32 %s1742_s20, 4  ;;  %s47_s21 = int_to_ptr.vmem [resolvable:$true] %s46_s21 }
  0x10   :  { %s1701_s22 = scalar_lea.vmem %s47_s21, 2048  ;;  %p1706_p6 = scmp.lt.s32.totalorder %s47_s21, %s47_s21 }
  0x11   :  { %p1702_p5 = scmp.ne.s32.totalorder %s47_s21, %s1701_s22  ;;  %p1707_p7 = scmp.lt.s32.totalorder %s1701_s22, %s1701_s22 }
  0x13   :  { %p1708_p8 = por %p1707_p7, %p1706_p6 }
  0x15   :  { %p1709_p9 = pnand %p1708_p8, %p1702_p5 }
  0x17   :  { %1712 = shalt.err (!%p1709_p9)
}
  0x18   :  { %s1743_s23 = smov 512   ;;  %s1744_s24 = smov 32  }
  0x19   :  { %52 = dma.hbm_to_vmem [thread:$0]  %s3279_s6, 2048, %s47_s21, [#allocation7], %s1743_s23, %s1743_s23, %s1744_s24  }
  0x1a   :  { %1733 = dma.done.wait [#allocation4], 1536  }
  0x1b   :  { %1734 = vsyncadd [#allocation4], 4294965760 }
  0x1c   :  { %1735 = dma.done.wait [#allocation7], 2048  }
  0x1d   :  { %1736 = vsyncadd [#allocation7], 4294965248  ;;  %v3284_v0 = vmov 0.0   ;;  %v1822_v1 = vstv %s3273_s0  ;;  %vm75_vm0 = vcmask 1043456   ;;  %v66_v2 = vld [vmem:[%s3274_s1] sm:$0xff]  ;;  %vm80_vm1 = vcmask 1044480  }
  0x1e   :  { %179 = vmatprep.mubr.f32.mxu0 %v3284_v0  ;;  %268 = vmatprep.mubr.f32.mxu1 %v3284_v0  ;;  %3370 = vst [vmem:[#allocation12_spill] sm:$0xff] %v1822_v1  ;;  %v67_v3 = vld [vmem:[%s3274_s1 + $0x8] sm:$0xff]  ;;  %v71_v4 = vcombine.high %v66_v2, %v66_v2  ;;  %v76_v6 = vsel %vm75_vm0, %v66_v2, %v1822_v1  ;;  %vm102_vm2 = vcmask 1045504   ;;  %v85_v14 = vld [vmem:[%s3276_s3] sm:$0xff]  ;;  %vm89_vm3 = vcmask 48128   ;;  %v87_v16 = vld [vmem:[%s3276_s3 + $0x10] sm:$0xff] }
  0x1f   :  { %v72_v5 = vcombine.high %v67_v3, %v67_v3  ;;  %v78_v7 = vsel %vm75_vm0, %v67_v3, %v1822_v1  ;;  %v81_v10 = vsel %vm80_vm1, %v76_v6, 1.0  ;;  %v86_v15 = vld [vmem:[%s3276_s3 + $0x8] sm:$0xff]  ;;  %v88_v17 = vld [vmem:[%s3276_s3 + $0x18] sm:$0xff]  ;;  %s1746_s17 = smov 111   ;;  %s1747_s18 = smov 1   ;;  %vm1003_vm10 = vcmask 261120  }
  0x20   :  { %v77_v8 = vsel %vm75_vm0, %v71_v4, %v1822_v1  ;;  %v83_v11 = vsel %vm80_vm1, %v78_v7, 1.0  ;;  %s1748_s3 = smov 15   ;;  %s1749_s19 = smov 112  }
  0x21   :  { %v79_v9 = vsel %vm75_vm0, %v72_v5, %v1822_v1  ;;  %v82_v12 = vsel %vm80_vm1, %v77_v8, 1.0  ;;  %s1750_s20 = smov 16   ;;  %s1751_s21 = smov 17  }
  0x22   :  { %v84_v13 = vsel %vm80_vm1, %v79_v9, 1.0  ;;  %1625 = vmatprep.subr.msk.mxu0 %vm102_vm2, %v82_v12  ;;  %s1752_s22 = smov 113   ;;  %s1753_s23 = smov 127  }
  0x23   :  { %1631 = vmatprep.subr.msk.mxu1 %vm102_vm2, %v84_v13  ;;  %1626 = vmatpush1.msk.msra.mxu0 %vm102_vm2, %v81_v10 }
  0x24   :  { %1632 = vmatpush1.msk.msra.mxu1 %vm102_vm2, %v83_v11  ;;  %1627 = vmatmul.mubr.msk.f32.vlgmr.msra.gmra.mxu0 %vm89_vm3, %v85_v14 }
  0x25   :  { %1633 = vmatmul.mubr.msk.f32.vlgmr.msra.gmra.mxu1 %vm89_vm3, %v85_v14  ;;  %185 = vmatprep.mubr.f32.mxu0 %v3284_v0 }
  0x26   :  { %274 = vmatprep.mubr.f32.mxu1 %v3284_v0 }
  0x28   :  { %1628 = vmatmul.mubr.msk.f32.gmra.mxu0 %vm89_vm3, %v86_v15 }
  0x29   :  { %1634 = vmatmul.mubr.msk.f32.gmra.mxu1 %vm89_vm3, %v86_v15  ;;  %191 = vmatprep.mubr.f32.mxu0 %v3284_v0 }
  0x2a   :  { %280 = vmatprep.mubr.f32.mxu1 %v3284_v0 }
  0x2c   :  { %1629 = vmatmul.mubr.msk.f32.gmra.mxu0 %vm89_vm3, %v87_v16 }
  0x2d   :  { %1635 = vmatmul.mubr.msk.f32.gmra.mxu1 %vm89_vm3, %v87_v16  ;;  %197 = vmatprep.mubr.f32.mxu0 %v3284_v0 }
  0x2e   :  { %286 = vmatprep.mubr.f32.mxu1 %v3284_v0 }
  0x30   :  { %1630 = vmatmul.mubr.msk.f32.gmra.mxu0 %vm89_vm3, %v88_v17 }
  0x31   :  { %1636 = vmatmul.mubr.msk.f32.gmra.mxu1 %vm89_vm3, %v88_v17 }
  0x32   :  { %1169 = vmatprep.mubr.f32.mxu1 %v3284_v0 }
  0xe4   :  { %v181_v18 = vpop.f32.mrf.mxu0 }
  0xe5   :  { %v270_v19 = vpop.f32.mrf.mxu1  ;;  %v1861_v20 = vmax.f32 %v181_v18, 0.0 }
  0xe6   :  { %v1863_v21 = vmax.f32 %v270_v19, 0.0  ;;  %v183_v22 = vpop.f32.mrf.mxu0 }
  0xe7   :  { %3371 = vst [vmem:[#allocation13_spill] sm:$0xff] %v1861_v20  ;;  %562 = vrot.lane.b32.xlu1 %v1861_v20, %s1747_s18  ;;  %v1877_v23 = vmax.f32 %v183_v22, 0.0  ;;  %v272_v24 = vpop.f32.mrf.mxu1 }
  0xe8   :  { %3372 = vst [vmem:[#allocation14_spill] sm:$0xff] %v1863_v21  ;;  %902 = vrot.lane.b32.xlu0 %v1863_v21, %s1746_s17  ;;  %v1887_v25 = vmax.f32 %v272_v24, 0.0  ;;  %v187_v26 = vpop.f32.mrf.mxu0 }
  0xe9   :  { %3373 = vst [vmem:[#allocation15_spill] sm:$0xff] %v1877_v23  ;;  %v1909_v27 = vmax.f32 %v187_v26, 0.0  ;;  %v276_v28 = vpop.f32.mrf.mxu1 }
  0xea   :  { %3374 = vst [vmem:[#allocation16_spill] sm:$0xff] %v1887_v25  ;;  %v1915_v29 = vmax.f32 %v276_v28, 0.0  ;;  %v189_v32 = vpop.f32.mrf.mxu0 }
  0xeb   :  { %481 = vrot.lane.b32.xlu1 %v1861_v20, %s1748_s3  ;;  %3375 = vst [vmem:[#allocation17_spill] sm:$0xff] %v1909_v27  ;;  %v278_v30 = vpop.f32.mrf.mxu1  ;;  %v1939_v33 = vmax.f32 %v189_v32, 0.0 }
  0xec   :  { %886 = vrot.lane.b32.xlu0 %v1861_v20, %s1746_s17  ;;  %3376 = vst [vmem:[#allocation18_spill] sm:$0xff] %v1915_v29  ;;  %v1933_v31 = vmax.f32 %v278_v30, 0.0  ;;  %v193_v34 = vpop.f32.mrf.mxu0  ;;  %v3286_v30 = vlaneseq }
  0xed   :  { %3378 = vst [vmem:[#allocation20_spill] sm:$0xff] %v1939_v33  ;;  %v1965_v35 = vmax.f32 %v193_v34, 0.0  ;;  %v282_v36 = vpop.f32.mrf.mxu1 }
  0xee   :  { %3377 = vst [vmem:[#allocation19_spill] sm:$0xff] %v1933_v31  ;;  %v1967_v37 = vmax.f32 %v282_v36, 0.0  ;;  %v195_v38 = vpop.f32.mrf.mxu0  ;;  %v2156_v36 = vand.u32 127, %v3286_v30 }
  0xef   :  { %578 = vrot.lane.b32.xlu1 %v1863_v21, %s1747_s18  ;;  %3379 = vst [vmem:[#allocation21_spill] sm:$0xff] %v1965_v35  ;;  %v1989_v39 = vmax.f32 %v195_v38, 0.0  ;;  %v284_v42 = vpop.f32.mrf.mxu1 }
  0xf0   :  { %805 = vrot.lane.b32.xlu0 %v1861_v20, %s1749_s19  ;;  %3380 = vst [vmem:[#allocation22_spill] sm:$0xff] %v1967_v37  ;;  %v2007_v43 = vmax.f32 %v284_v42, 0.0  ;;  %v199_v54 = vpop.f32.mrf.mxu0  ;;  %vm351_vm4 = vcmp.lt.s32.totalorder %v2156_v36, 17  ;;  %vm594_vm5 = vcmp.lt.s32.totalorder %v2156_v36, 1  ;;  %vm513_vm6 = vcmp.lt.s32.totalorder %v2156_v36, 15 }
  0xf1   :  { %3381 = vst [vmem:[#allocation23_spill] sm:$0xff] %v1989_v39  ;;  %v2045_v55 = vmax.f32 %v199_v54, 0.0  ;;  %v288_v58 = vpop.f32.mrf.mxu1  ;;  %vm432_vm7 = vcmp.lt.s32.totalorder %v2156_v36, 16  ;;  %vm918_vm8 = vcmp.lt.s32.totalorder %v2156_v36, 111  ;;  %vm837_vm9 = vcmp.lt.s32.totalorder %v2156_v36, 112 }
  0xf2   :  { %3383 = vst [vmem:[#allocation25_spill] sm:$0xff] %v2007_v43  ;;  %v2055_v59 = vmax.f32 %v288_v58, 0.0  ;;  %v201_v6 = vpop.f32.mrf.mxu0  ;;  %vm756_vm11 = vcmp.lt.s32.totalorder %v2156_v36, 113  ;;  %vm675_vm12 = vcmp.lt.s32.totalorder %v2156_v36, 127 }
  0xf3   :  { %400 = vrot.lane.b32.xlu1 %v1861_v20, %s1750_s20  ;;  %3386 = vst [vmem:[#allocation28_spill] sm:$0xff] %v2045_v55  ;;  %v2093_v7 = vmax.f32 %v201_v6, 0.0  ;;  %v290_v16 = vpop.f32.mrf.mxu1 }
  0xf4   :  { %570 = vrot.lane.b32.xlu0 %v1877_v23, %s1747_s18  ;;  %3387 = vst [vmem:[#allocation29_spill] sm:$0xff] %v2055_v59  ;;  %v2127_v17 = vmax.f32 %v290_v16, 0.0 }
  0xf5   :  { %3390 = vst [vmem:[#allocation32_spill] sm:$0xff] %v2093_v7 }
  0xf6   :  { %3398 = vst [vmem:[#allocation40_spill] sm:$0xff] %v2127_v17 }
  0xf7   :  { %497 = vrot.lane.b32.xlu1 %v1863_v21, %s1748_s3 }
  0xf8   :  { %489 = vrot.lane.b32.xlu0 %v1877_v23, %s1748_s3 }
  0xfb   :  { %317 = vrot.lane.b32.xlu1 %v1861_v20, %s1751_s21 }
  0xfc   :  { %505 = vrot.lane.b32.xlu0 %v1887_v25, %s1748_s3 }
  0xff   :  { %416 = vrot.lane.b32.xlu1 %v1863_v21, %s1750_s20 }
 0x100   :  { %408 = vrot.lane.b32.xlu0 %v1877_v23, %s1750_s20 }
 0x103   :  { %821 = vrot.lane.b32.xlu1 %v1863_v21, %s1749_s19 }
 0x104   :  { %424 = vrot.lane.b32.xlu0 %v1887_v25, %s1750_s20 }
 0x107   :  { %333 = vrot.lane.b32.xlu1 %v1863_v21, %s1751_s21 }
 0x108   :  { %325 = vrot.lane.b32.xlu0 %v1877_v23, %s1751_s21 }
 0x10b   :  { %586 = vrot.lane.b32.xlu1 %v1887_v25, %s1747_s18 }
 0x10c   :  { %341 = vrot.lane.b32.xlu0 %v1887_v25, %s1751_s21 }
 0x10f   :  { %894 = vrot.lane.b32.xlu1 %v1877_v23, %s1746_s17 }
 0x110   :  { %813 = vrot.lane.b32.xlu0 %v1877_v23, %s1749_s19 }
 0x113   :  { %483 = vrot.lane.b32.xlu1 %v1909_v27, %s1748_s3 }
 0x114   :  { %564 = vrot.lane.b32.xlu0 %v1909_v27, %s1747_s18 }
 0x117   :  { %580 = vrot.lane.b32.xlu1 %v1915_v29, %s1747_s18 }
 0x118   :  { %904 = vrot.lane.b32.xlu0 %v1915_v29, %s1746_s17 }
 0x11b   :  { %402 = vrot.lane.b32.xlu1 %v1909_v27, %s1750_s20 }
 0x11c   :  { %888 = vrot.lane.b32.xlu0 %v1909_v27, %s1746_s17 }
 0x11f   :  { %499 = vrot.lane.b32.xlu1 %v1915_v29, %s1748_s3 }
 0x120   :  { %807 = vrot.lane.b32.xlu0 %v1909_v27, %s1749_s19 }
 0x123   :  { %319 = vrot.lane.b32.xlu1 %v1909_v27, %s1751_s21 }
 0x124   :  { %588 = vrot.lane.b32.xlu0 %v1933_v31, %s1747_s18 }
 0x127   :  { %418 = vrot.lane.b32.xlu1 %v1915_v29, %s1750_s20 }
 0x128   :  { %491 = vrot.lane.b32.xlu0 %v1939_v33, %s1748_s3 }
 0x12b   :  { %823 = vrot.lane.b32.xlu1 %v1915_v29, %s1749_s19 }
 0x12c   :  { %410 = vrot.lane.b32.xlu0 %v1939_v33, %s1750_s20 }
 0x12f   :  { %335 = vrot.lane.b32.xlu1 %v1915_v29, %s1751_s21 }
 0x130   :  { %426 = vrot.lane.b32.xlu0 %v1933_v31, %s1750_s20 }
 0x133   :  { %572 = vrot.lane.b32.xlu1 %v1939_v33, %s1747_s18 }
 0x134   :  { %327 = vrot.lane.b32.xlu0 %v1939_v33, %s1751_s21 }
 0x137   :  { %896 = vrot.lane.b32.xlu1 %v1939_v33, %s1746_s17 }
 0x138   :  { %343 = vrot.lane.b32.xlu0 %v1933_v31, %s1751_s21 }
 0x13b   :  { %507 = vrot.lane.b32.xlu1 %v1933_v31, %s1748_s3 }
 0x13c   :  { %815 = vrot.lane.b32.xlu0 %v1939_v33, %s1749_s19 }
 0x13f   :  { %566 = vrot.lane.b32.xlu1 %v1965_v35, %s1747_s18 }
 0x140   :  { %734 = vrot.lane.b32.xlu0 %v1939_v33, %s1752_s22 }
 0x143   :  { %485 = vrot.lane.b32.xlu1 %v1965_v35, %s1748_s3 }
 0x144   :  { %906 = vrot.lane.b32.xlu0 %v1967_v37, %s1746_s17 }
 0x147   :  { %582 = vrot.lane.b32.xlu1 %v1967_v37, %s1747_s18 }
 0x148   :  { %890 = vrot.lane.b32.xlu0 %v1965_v35, %s1746_s17 }
 0x14b   :  { %404 = vrot.lane.b32.xlu1 %v1965_v35, %s1750_s20 }
 0x14c   :  { %809 = vrot.lane.b32.xlu0 %v1965_v35, %s1749_s19 }
 0x14f   :  { %501 = vrot.lane.b32.xlu1 %v1967_v37, %s1748_s3 }
 0x150   :  { %728 = vrot.lane.b32.xlu0 %v1965_v35, %s1752_s22 }
 0x153   :  { %321 = vrot.lane.b32.xlu1 %v1965_v35, %s1751_s21 }
 0x154   :  { %574 = vrot.lane.b32.xlu0 %v1989_v39, %s1747_s18 }
 0x157   :  { %420 = vrot.lane.b32.xlu1 %v1967_v37, %s1750_s20 }
 0x158   :  { %493 = vrot.lane.b32.xlu0 %v1989_v39, %s1748_s3 }
 0x159   :  { %v2001_v41 = vpop.permute.xlu1 %562 }
 0x15a   :  { %v1999_v40 = vpop.permute.xlu0 %902 }
 0x15b   :  { %3382 = vst [vmem:[#allocation24_spill] sm:$0xff] %v1999_v40  ;;  %825 = vrot.lane.b32.xlu1 %v1967_v37, %s1749_s19 }
 0x15c   :  { %412 = vrot.lane.b32.xlu0 %v1989_v39, %s1750_s20 }
 0x15d   :  { %v2011_v45 = vpop.permute.xlu1 %481 }
 0x15e   :  { %v2009_v44 = vpop.permute.xlu0 %886 }
 0x15f   :  { %3384 = vst [vmem:[#allocation26_spill] sm:$0xff] %v2009_v44  ;;  %337 = vrot.lane.b32.xlu1 %v1967_v37, %s1751_s21 }
 0x160   :  { %428 = vrot.lane.b32.xlu0 %v2007_v43, %s1750_s20 }
 0x161   :  { %v2019_v47 = vpop.permute.xlu1 %578 }
 0x162   :  { %v2017_v46 = vpop.permute.xlu0 %805 }
 0x163   :  { %3385 = vst [vmem:[#allocation27_spill] sm:$0xff] %v2017_v46  ;;  %744 = vrot.lane.b32.xlu1 %v1967_v37, %s1752_s22 }
 0x164   :  { %329 = vrot.lane.b32.xlu0 %v1989_v39, %s1751_s21 }
 0x165   :  { %v2025_v48 = vpop.permute.xlu1 %400 }
 0x166   :  { %v2027_v49 = vpop.permute.xlu0 %570 }
 0x167   :  { %590 = vrot.lane.b32.xlu1 %v2007_v43, %s1747_s18 }
 0x168   :  { %345 = vrot.lane.b32.xlu0 %v2007_v43, %s1751_s21 }
 0x169   :  { %v2033_v50 = vpop.permute.xlu1 %497 }
 0x16a   :  { %v2035_v51 = vpop.permute.xlu0 %489 }
 0x16b   :  { %898 = vrot.lane.b32.xlu1 %v1989_v39, %s1746_s17 }
 0x16c   :  { %817 = vrot.lane.b32.xlu0 %v1989_v39, %s1749_s19 }
 0x16d   :  { %v2041_v52 = vpop.permute.xlu1 %317 }
 0x16e   :  { %v2043_v53 = vpop.permute.xlu0 %505 }
 0x16f   :  { %509 = vrot.lane.b32.xlu1 %v2007_v43, %s1748_s3 }
 0x170   :  { %736 = vrot.lane.b32.xlu0 %v1989_v39, %s1752_s22 }
 0x171   :  { %v2051_v56 = vpop.permute.xlu1 %416 }
 0x172   :  { %v2053_v57 = vpop.permute.xlu0 %408 }
 0x173   :  { %487 = vrot.lane.b32.xlu1 %v2045_v55, %s1748_s3 }
 0x174   :  { %568 = vrot.lane.b32.xlu0 %v2045_v55, %s1747_s18 }
 0x175   :  { %v2061_v60 = vpop.permute.xlu1 %821 }
 0x176   :  { %3388 = vst [vmem:[#allocation30_spill] sm:$0xff] %v2061_v60  ;;  %v2063_v61 = vpop.permute.xlu0 %424 }
 0x177   :  { %584 = vrot.lane.b32.xlu1 %v2055_v59, %s1747_s18 }
 0x178   :  { %908 = vrot.lane.b32.xlu0 %v2055_v59, %s1746_s17 }
 0x179   :  { %v2069_v62 = vpop.permute.xlu1 %333 }
 0x17a   :  { %v2071_v63 = vpop.permute.xlu0 %325 }
 0x17b   :  { %406 = vrot.lane.b32.xlu1 %v2045_v55, %s1750_s20 }
 0x17c   :  { %892 = vrot.lane.b32.xlu0 %v2045_v55, %s1746_s17 }
 0x17d   :  { %v2077_v2 = vpop.permute.xlu1 %586 }
 0x17e   :  { %v2079_v3 = vpop.permute.xlu0 %341 }
 0x17f   :  { %503 = vrot.lane.b32.xlu1 %v2055_v59, %s1748_s3 }
 0x180   :  { %811 = vrot.lane.b32.xlu0 %v2045_v55, %s1749_s19 }
 0x181   :  { %v2085_v4 = vpop.permute.xlu1 %894 }
 0x182   :  { %v2087_v5 = vpop.permute.xlu0 %813 }
 0x183   :  { %3389 = vst [vmem:[#allocation31_spill] sm:$0xff] %v2087_v5  ;;  %323 = vrot.lane.b32.xlu1 %v2045_v55, %s1751_s21 }
 0x184   :  { %730 = vrot.lane.b32.xlu0 %v2045_v55, %s1752_s22 }
 0x185   :  { %v2095_v8 = vpop.permute.xlu1 %483 }
 0x186   :  { %3391 = vst [vmem:[#allocation33_spill] sm:$0xff] %v2095_v8  ;;  %v2097_v9 = vpop.permute.xlu0 %564 }
 0x187   :  { %422 = vrot.lane.b32.xlu1 %v2055_v59, %s1750_s20 }
 0x188   :  { %576 = vrot.lane.b32.xlu0 %v2093_v7, %s1747_s18 }
 0x189   :  { %v2103_v10 = vpop.permute.xlu1 %580 }
 0x18a   :  { %3392 = vst [vmem:[#allocation34_spill] sm:$0xff] %v2103_v10  ;;  %v2105_v11 = vpop.permute.xlu0 %904 }
 0x18b   :  { %3393 = vst [vmem:[#allocation35_spill] sm:$0xff] %v2105_v11  ;;  %827 = vrot.lane.b32.xlu1 %v2055_v59, %s1749_s19 }
 0x18c   :  { %495 = vrot.lane.b32.xlu0 %v2093_v7, %s1748_s3 }
 0x18d   :  { %v2111_v12 = vpop.permute.xlu1 %402 }
 0x18e   :  { %3394 = vst [vmem:[#allocation36_spill] sm:$0xff] %v2111_v12  ;;  %v2113_v13 = vpop.permute.xlu0 %888 }
 0x18f   :  { %3395 = vst [vmem:[#allocation37_spill] sm:$0xff] %v2113_v13  ;;  %339 = vrot.lane.b32.xlu1 %v2055_v59, %s1751_s21 }
 0x190   :  { %726 = vrot.lane.b32.xlu0 %v1909_v27, %s1752_s22 }
 0x191   :  { %v2119_v14 = vpop.permute.xlu1 %499 }
 0x192   :  { %3396 = vst [vmem:[#allocation38_spill] sm:$0xff] %v2119_v14  ;;  %v2121_v15 = vpop.permute.xlu0 %807 }
 0x193   :  { %3397 = vst [vmem:[#allocation39_spill] sm:$0xff] %v2121_v15  ;;  %746 = vrot.lane.b32.xlu1 %v2055_v59, %s1752_s22 }
 0x194   :  { %740 = vrot.lane.b32.xlu0 %v1863_v21, %s1752_s22 }
 0x195   :  { %v2129_v18 = vpop.permute.xlu1 %319 }
 0x196   :  { %3399 = vst [vmem:[#allocation41_spill] sm:$0xff] %v2129_v18  ;;  %v2131_v19 = vpop.permute.xlu0 %588 }
 0x197   :  { %592 = vrot.lane.b32.xlu1 %v2127_v17, %s1747_s18 }
 0x198   :  { %724 = vrot.lane.b32.xlu0 %v1861_v20, %s1752_s22 }
 0x199   :  { %v2137_v22 = vpop.permute.xlu1 %418 }
 0x19a   :  { %3400 = vst [vmem:[#allocation42_spill] sm:$0xff] %v2137_v22  ;;  %v2139_v24 = vpop.permute.xlu0 %491 }
 0x19b   :  { %900 = vrot.lane.b32.xlu1 %v2093_v7, %s1746_s17 }
 0x19c   :  { %665 = vrot.lane.b32.xlu0 %v2055_v59, %s1753_s23 }
 0x19d   :  { %v2145_v26 = vpop.permute.xlu1 %823 }
 0x19e   :  { %3401 = vst [vmem:[#allocation43_spill] sm:$0xff] %v2145_v26  ;;  %v2147_v28 = vpop.permute.xlu0 %410 }
 0x19f   :  { %3402 = vst [vmem:[#allocation44_spill] sm:$0xff] %v2147_v28  ;;  %511 = vrot.lane.b32.xlu1 %v2127_v17, %s1748_s3 }
 0x1a0   :  { %649 = vrot.lane.b32.xlu0 %v2045_v55, %s1753_s23 }
 0x1a1   :  { %v336_v32 = vpop.permute.xlu1 %335 }
 0x1a2   :  { %v2153_v34 = vpop.permute.xlu0 %426 }
 0x1a3   :  { %3403 = vst [vmem:[#allocation45_spill] sm:$0xff] %v2153_v34  ;;  %742 = vrot.lane.b32.xlu1 %v1915_v29, %s1752_s22 }
 0x1a4   :  { %414 = vrot.lane.b32.xlu0 %v2093_v7, %s1750_s20 }
 0x1a5   :  { %v2165_v42 = vpop.permute.xlu1 %572 }
 0x1a6   :  { %v2163_v38 = vpop.permute.xlu0 %327 }
 0x1a7   :  { %3404 = vst [vmem:[#allocation46_spill] sm:$0xff] %v2163_v38  ;;  %v2170_v54 = vsel %vm351_vm4, %v2163_v38, %v336_v32  ;;  %732 = vrot.lane.b32.xlu1 %v1877_v23, %s1752_s22 }
 0x1a8   :  { %3405 = vst [vmem:[#allocation47_spill] sm:$0xff] %v2170_v54  ;;  %430 = vrot.lane.b32.xlu0 %v2127_v17, %s1750_s20 }
 0x1a9   :  { %v2178_v6 = vpop.permute.xlu1 %896 }
 0x1aa   :  { %v2176_v58 = vpop.permute.xlu0 %343 }
 0x1ab   :  { %3406 = vst [vmem:[#allocation48_spill] sm:$0xff] %v2176_v58  ;;  %v2183_v16 = vsel %vm351_vm4, %v336_v32, %v2176_v58  ;;  %833 = vrot.lane.b32.xlu1 %v2007_v43, %s1749_s19 }
 0x1ac   :  { %3407 = vst [vmem:[#allocation49_spill] sm:$0xff] %v2183_v16  ;;  %331 = vrot.lane.b32.xlu0 %v2093_v7, %s1751_s21 }
 0x1ad   :  { %v2191_v30 = vpop.permute.xlu1 %507 }
 0x1ae   :  { %v2189_v0 = vpop.permute.xlu0 %815  ;;  %3409 = vst [vmem:[#allocation51_spill] sm:$0xff] %v2191_v30 }
 0x1af   :  { %3408 = vst [vmem:[#allocation50_spill] sm:$0xff] %v2189_v0  ;;  %655 = vrot.lane.b32.xlu1 %v1989_v39, %s1753_s23 }
 0x1b0   :  { %347 = vrot.lane.b32.xlu0 %v2127_v17, %s1751_s21 }
 0x1b1   :  { %v2199_v32 = vpop.permute.xlu1 %566 }
 0x1b2   :  { %v2197_v59 = vpop.permute.xlu0 %734 }
 0x1b3   :  { %3410 = vst [vmem:[#allocation52_spill] sm:$0xff] %v2197_v59  ;;  %831 = vrot.lane.b32.xlu1 %v1933_v31, %s1749_s19 }
 0x1b4   :  { %663 = vrot.lane.b32.xlu0 %v1967_v37, %s1753_s23 }
 0x1b5   :  { %v2207_v16 = vpop.permute.xlu1 %485 }
 0x1b6   :  { %v2205_v55 = vpop.permute.xlu0 %906  ;;  %3412 = vst [vmem:[#allocation54_spill] sm:$0xff] %v2207_v16 }
 0x1b7   :  { %3411 = vst [vmem:[#allocation53_spill] sm:$0xff] %v2205_v55  ;;  %653 = vrot.lane.b32.xlu1 %v1939_v33, %s1753_s23 }
 0x1b8   :  { %819 = vrot.lane.b32.xlu0 %v2093_v7, %s1749_s19 }
 0x1b9   :  { %v2215_v59 = vpop.permute.xlu1 %582 }
 0x1ba   :  { %v2213_v39 = vpop.permute.xlu0 %890  ;;  %3414 = vst [vmem:[#allocation56_spill] sm:$0xff] %v2215_v59 }
 0x1bb   :  { %3413 = vst [vmem:[#allocation55_spill] sm:$0xff] %v2213_v39  ;;  %829 = vrot.lane.b32.xlu1 %v1887_v25, %s1749_s19 }
 0x1bc   :  { %647 = vrot.lane.b32.xlu0 %v1965_v35, %s1753_s23 }
 0x1bd   :  { %v405_v15 = vpop.permute.xlu1 %404 }
 0x1be   :  { %v2221_v37 = vpop.permute.xlu0 %809 }
 0x1bf   :  { %3415 = vst [vmem:[#allocation57_spill] sm:$0xff] %v2221_v37  ;;  %835 = vrot.lane.b32.xlu1 %v2127_v17, %s1749_s19 }
 0x1c0   :  { %738 = vrot.lane.b32.xlu0 %v2093_v7, %s1752_s22 }
 0x1c1   :  { %v502_v0 = vpop.permute.xlu1 %501 }
 0x1c2   :  { %v2227_v33 = vpop.permute.xlu0 %728 }
 0x1c3   :  { %3416 = vst [vmem:[#allocation58_spill] sm:$0xff] %v2227_v33  ;;  %657 = vrot.lane.b32.xlu1 %v2093_v7, %s1753_s23 }
 0x1c4   :  { %661 = vrot.lane.b32.xlu0 %v1915_v29, %s1753_s23 }
 0x1c5   :  { %v322_v35 = vpop.permute.xlu1 %321 }
 0x1c6   :  { %v575_v37 = vpop.permute.xlu0 %574 }
 0x1c7   :  { %v2237_v26 = vsel %vm594_vm5, %v575_v37, %v2215_v59  ;;  %v2242_v33 = vsel %vm594_vm5, %v2199_v32, %v575_v37  ;;  %651 = vrot.lane.b32.xlu1 %v1877_v23, %s1753_s23 }
 0x1c8   :  { %3417 = vst [vmem:[#allocation59_spill] sm:$0xff] %v2237_v26  ;;  %645 = vrot.lane.b32.xlu0 %v1909_v27, %s1753_s23 }
 0x1c9   :  { %v421_v29 = vpop.permute.xlu1 %420 }
 0x1ca   :  { %v494_v7 = vpop.permute.xlu0 %493 }
 0x1cb   :  { %v2251_v54 = vsel %vm513_vm6, %v494_v7, %v502_v0  ;;  %v2256_v58 = vsel %vm513_vm6, %v2207_v16, %v494_v7  ;;  %754 = vrot.lane.b32.xlu1 %v2127_v17, %s1752_s22  ;;  %v968_v7 = vld [vmem:[#allocation3 + $0x8] sm:$0xff] }
 0x1cc   :  { %3418 = vst [vmem:[#allocation60_spill] sm:$0xff] %v2251_v54  ;;  %3419 = vst [vmem:[#allocation61_spill] sm:$0xff] %v2256_v58  ;;  %659 = vrot.lane.b32.xlu0 %v1863_v21, %s1753_s23  ;;  %1080 = vmatprep.mubr.f32.mxu0 %v968_v7 }
 0x1cd   :  { %v2263_v37 = vpop.permute.xlu1 %825 }
 0x1ce   :  { %3420 = vst [vmem:[#allocation62_spill] sm:$0xff] %v2263_v37  ;;  %v413_v23 = vpop.permute.xlu0 %412 }
 0x1cf   :  { %v2267_v27 = vsel %vm432_vm7, %v413_v23, %v421_v29  ;;  %v2271_v54 = vsel %vm432_vm7, %v405_v15, %v413_v23  ;;  %752 = vrot.lane.b32.xlu1 %v2007_v43, %s1752_s22 }
 0x1d0   :  { %3421 = vst [vmem:[#allocation63_spill] sm:$0xff] %v2267_v27  ;;  %3422 = vst [vmem:[#allocation64_spill] sm:$0xff] %v2271_v54  ;;  %643 = vrot.lane.b32.xlu0 %v1861_v20, %s1753_s23  ;;  %v980_v54 = vld [vmem:[%s3278_s5 + $0x8] sm:$0xff] }
 0x1d1   :  { %v338_v21 = vpop.permute.xlu1 %337 }
 0x1d2   :  { %v429_v18 = vpop.permute.xlu0 %428 }
 0x1d3   :  { %v2279_v37 = vsel %vm432_vm7, %v421_v29, %v429_v18  ;;  %v2283_v27 = vsel %vm432_vm7, %v429_v18, %v405_v15  ;;  %748 = vrot.lane.b32.xlu1 %v1887_v25, %s1752_s22 }
 0x1d4   :  { %3423 = vst [vmem:[#allocation65_spill] sm:$0xff] %v2279_v37  ;;  %3424 = vst [vmem:[#allocation66_spill] sm:$0xff] %v2283_v27  ;;  %750 = vrot.lane.b32.xlu0 %v1933_v31, %s1752_s22  ;;  %v979_v27 = vld [vmem:[%s3278_s5] sm:$0xff] }
 0x1d5   :  { %v2289_v23 = vpop.permute.xlu1 %744 }
 0x1d6   :  { %3425 = vst [vmem:[#allocation67_spill] sm:$0xff] %v2289_v23  ;;  %v330_v7 = vpop.permute.xlu0 %329 }
 0x1d7   :  { %v2293_v20 = vsel %vm351_vm4, %v330_v7, %v338_v21  ;;  %v2297_v29 = vsel %vm351_vm4, %v322_v35, %v330_v7  ;;  %671 = vrot.lane.b32.xlu1 %v2007_v43, %s1753_s23 }
 0x1d8   :  { %3426 = vst [vmem:[#allocation68_spill] sm:$0xff] %v2293_v20  ;;  %3427 = vst [vmem:[#allocation69_spill] sm:$0xff] %v2297_v29  ;;  %673 = vrot.lane.b32.xlu0 %v2127_v17, %s1753_s23  ;;  %v3438_v29 = vlaneseq }
 0x1d9   :  { %v2303_v15 = vpop.permute.xlu1 %590 }
 0x1da   :  { %v346_v18 = vpop.permute.xlu0 %345  ;;  %v2357_v38 = vshrl.u32 %v3438_v29, 7 }
 0x1db   :  { %v2307_v23 = vsel %vm351_vm4, %v338_v21, %v346_v18  ;;  %v2311_v20 = vsel %vm351_vm4, %v346_v18, %v322_v35  ;;  %667 = vrot.lane.b32.xlu1 %v1887_v25, %s1753_s23 }
 0x1dc   :  { %3428 = vst [vmem:[#allocation70_spill] sm:$0xff] %v2307_v23  ;;  %3429 = vst [vmem:[#allocation71_spill] sm:$0xff] %v2311_v20  ;;  %669 = vrot.lane.b32.xlu0 %v1933_v31, %s1753_s23  ;;  %v613_v29 = vsub.s32 3, %v2357_v38  ;;  %v370_v14 = vsub.s32 0, %v2357_v38  ;;  %v2424_v46 = vsub.s32 7, %v2357_v38  ;;  %v2448_v10 = vsub.s32 6, %v2357_v38 }
 0x1dd   :  { %v2317_v7 = vpop.permute.xlu1 %898  ;;  %3439 = vst [vmem:[#allocation80_spill] sm:$0xff] %v2357_v38 }
 0x1de   :  { %v2319_v37 = vpop.permute.xlu0 %817  ;;  %3450 = vst [vmem:[#allocation91_spill] sm:$0xff] %v2424_v46  ;;  %3451 = vst [vmem:[#allocation92_spill] sm:$0xff] %v2448_v10 }
 0x1df   :  { %3430 = vst [vmem:[#allocation72_spill] sm:$0xff] %v2319_v37  ;;  %914 = vrot.lane.b32.xlu1 %v2007_v43, %s1746_s17 }
 0x1e0   :  { %916 = vrot.lane.b32.xlu0 %v2127_v17, %s1746_s17 }
 0x1e1   :  { %v2325_v21 = vpop.permute.xlu1 %509 }
 0x1e2   :  { %3431 = vst [vmem:[#allocation73_spill] sm:$0xff] %v2325_v21  ;;  %v2327_v35 = vpop.permute.xlu0 %736  ;;  %v2332_v18 = vsel %vm513_vm6, %v502_v0, %v2325_v21  ;;  %v982_v0 = vld [vmem:[%s3278_s5 + $0x18] sm:$0xff] }
 0x1e3   :  { %3432 = vst [vmem:[#allocation74_spill] sm:$0xff] %v2327_v35  ;;  %3433 = vst [vmem:[#allocation75_spill] sm:$0xff] %v2332_v18  ;;  %910 = vrot.lane.b32.xlu1 %v1887_v25, %s1746_s17  ;;  %v981_v25 = vld [vmem:[%s3278_s5 + $0x10] sm:$0xff] }
 0x1e4   :  { %912 = vrot.lane.b32.xlu0 %v1933_v31, %s1746_s17  ;;  %v1754_v31 = vmov 0  }
 0x1e5   :  { %v2338_v23 = vpop.permute.xlu1 %487  ;;  %1668 = vset.pattern.permute.xlu0 %v1754_v31  ;;  %1669 = vset.pattern.permute.xlu1 %v1754_v31  ;;  %v1588_v31 = vld [vmem:[%s3281_s8] sm:$0xf] }
 0x1e6   :  { %v2340_v43 = vpop.permute.xlu0 %568 }
 0x1e7   :  { %995 = vperm.xlu1 %1669, %v981_v25   ;;  %v1589_v25 = vmul.f32 %v1588_v31, %v1822_v1  ;;  %v2401_v31 = vld [vmem:[%s3275_s2 + $0x10] sm:$0xff]  ;;  %v532_v1 = vsub.s32 2, %v2357_v38 }
 0x1e8   :  { %1000 = vperm.xlu0 %1668, %v982_v0   ;;  %v2381_v0 = vld [vmem:[%s3275_s2 + $0x8] sm:$0xff]  ;;  %3446 = vst [vmem:[#allocation87_spill] sm:$0xff] %v2401_v31  ;;  %v2421_v26 = vrot.slane %v2401_v31, %v613_v29  ;;  %v2455_v30 = vrot.slane %v2401_v31, %v370_v14 }
 0x1e9   :  { %v2342_v17 = vpop.permute.xlu1 %584  ;;  %v2387_v12 = vrot.slane %v2381_v0, %v613_v29  ;;  %v2427_v5 = vrot.slane %v2401_v31, %v532_v1  ;;  %v2462_v16 = vrot.slane %v2381_v0, %v370_v14 }
 0x1ea   :  { %3434 = vst [vmem:[#allocation76_spill] sm:$0xff] %v2342_v17  ;;  %v2344_v37 = vpop.permute.xlu0 %908 }
 0x1eb   :  { %3435 = vst [vmem:[#allocation77_spill] sm:$0xff] %v2344_v37  ;;  %990 = vperm.xlu1 %1669, %v980_v54  }
 0x1ec   :  { %985 = vperm.xlu0 %1668, %v979_v27  }
 0x1ed   :  { %v2346_v35 = vpop.permute.xlu1 %406 }
 0x1ee   :  { %3436 = vst [vmem:[#allocation78_spill] sm:$0xff] %v2346_v35  ;;  %v2348_v20 = vpop.permute.xlu0 %892 }
 0x1ef   :  { %3437 = vst [vmem:[#allocation79_spill] sm:$0xff] %v2348_v20 }
 0x1f0   :  { %1592 = vperm.xlu0 %1668, %v1589_v25   ;;  %v2413_v25 = vld [vmem:[%s3275_s2 + $0x18] sm:$0xff] }
 0x1f1   :  { %v2359_v18 = vpop.permute.xlu1 %503  ;;  %3448 = vst [vmem:[#allocation89_spill] sm:$0xff] %v2413_v25  ;;  %v2433_v35 = vrot.slane %v2413_v25, %v532_v1 }
 0x1f2   :  { %3440 = vst [vmem:[#allocation81_spill] sm:$0xff] %v2359_v18  ;;  %v2361_v22 = vpop.permute.xlu0 %811 }
 0x1f3   :  { %3441 = vst [vmem:[#allocation82_spill] sm:$0xff] %v2361_v22  ;;  %v1437_v22 = vld [vmem:[%s3282_s9] sm:$0xf] }
 0x1f4   :  { %1440 = vperm.xlu1 %1669, %v1437_v22   ;;  %v451_v22 = vsub.s32 1, %v2357_v38 }
 0x1f5   :  { %v2373_v34 = vpop.permute.xlu1 %323 }
 0x1f6   :  { %3442 = vst [vmem:[#allocation83_spill] sm:$0xff] %v2373_v34  ;;  %v2375_v18 = vpop.permute.xlu0 %730  ;;  %v2459_v21 = vrot.slane %v2413_v25, %v451_v22 }
 0x1f7   :  { %3443 = vst [vmem:[#allocation84_spill] sm:$0xff] %v2375_v18  ;;  %v2407_v18 = vld [vmem:[%s3275_s2] sm:$0xff] }
 0x1f8   :  { %3447 = vst [vmem:[#allocation88_spill] sm:$0xff] %v2407_v18  ;;  %v2430_v60 = vrot.slane %v2407_v18, %v532_v1  ;;  %v2442_v59 = vrot.slane %v2407_v18, %v451_v22  ;;  %v2465_v8 = vrot.slane %v2407_v18, %v370_v14  ;;  %v2469_v38 = vrot.slane %v2407_v18, %v2424_v46 }
 0x1f9   :  { %v2389_v28 = vpop.permute.xlu1 %422 }
 0x1fa   :  { %3444 = vst [vmem:[#allocation85_spill] sm:$0xff] %v2389_v28  ;;  %v2391_v34 = vpop.permute.xlu0 %576  ;;  %3454 = vst [vmem:[#allocation95_spill] sm:$0xff] %v2465_v8 }
 0x1fb   :  { %3445 = vst [vmem:[#allocation86_spill] sm:$0xff] %v2391_v34  ;;  %v606_v27 = vsel %vm594_vm5, %v2340_v43, %v2391_v34  ;;  %v2445_v34 = vrot.slane %v2381_v0, %v451_v22  ;;  %3455 = vst [vmem:[#allocation96_spill] sm:$0xff] %v2469_v38  ;;  %v518_v38 = vsel %vm513_vm6, %v2035_v51, %v2033_v50 }
 0x1fc   :  { %v640_v54 = vmul.f32 %v2387_v12, %v606_v27 }
 0x1fd   :  { %v2415_v27 = vpop.permute.xlu1 %827 }
 0x1fe   :  { %3449 = vst [vmem:[#allocation90_spill] sm:$0xff] %v2415_v27  ;;  %1016 = vmatprep.subr.mxu0 %v640_v54  ;;  %v2417_v28 = vpop.permute.xlu0 %495  ;;  %v2436_v54 = vrot.slane %v2381_v0, %v532_v1  ;;  %v2439_v27 = vrot.slane %v2401_v31, %v451_v22  ;;  %v614_v1 = vrot.slane %v2407_v18, %v613_v29 }
 0x1ff   :  { %v599_v22 = vsel %vm594_vm5, %v2027_v49, %v2019_v47  ;;  %v603_v31 = vsel %vm594_vm5, %v2001_v41, %v2027_v49  ;;  %v2500_v49 = vrot.slane %v2381_v0, %v2424_v46  ;;  %v437_v46 = vsel %vm432_vm7, %v2053_v57, %v2051_v56 }
 0x201   :  { %v2450_v17 = vpop.permute.xlu1 %339 }
 0x202   :  { %3452 = vst [vmem:[#allocation93_spill] sm:$0xff] %v2450_v17  ;;  %v2452_v58 = vpop.permute.xlu0 %726  ;;  %v2475_v17 = vrot.slane %v2413_v25, %v613_v29  ;;  %v526_v29 = vsel %vm513_vm6, %v2043_v53, %v2011_v45 }
 0x203   :  { %3453 = vst [vmem:[#allocation94_spill] sm:$0xff] %v2452_v58  ;;  %v2472_v58 = vrot.slane %v2413_v25, %v370_v14  ;;  %v522_v14 = vsel %vm513_vm6, %v2011_v45, %v2035_v51  ;;  %v2504_v25 = vrot.slane %v2407_v18, %v2448_v10  ;;  %v514_v45 = vsel %vm513_vm6, %v2033_v50, %v2043_v53 }
 0x204   :  { %v2534_v50 = vmul.f32 %v2427_v5, %v518_v38  ;;  %v628_v53 = vmul.f32 %v2387_v12, %v603_v31  ;;  %v360_v38 = vsel %vm351_vm4, %v2041_v52, %v2071_v63  ;;  %v2556_v31 = vmul.f32 %v2439_v27, %v437_v46 }
 0x205   :  { %3456 = vst [vmem:[#allocation97_spill] sm:$0xff] %v2472_v58  ;;  %3457 = vst [vmem:[#allocation98_spill] sm:$0xff] %v2504_v25  ;;  %v2508_v58 = vrot.slane %v2381_v0, %v2448_v10  ;;  %v2510_v51 = vpop.permute.xlu1 %746  ;;  %v441_v25 = vsel %vm432_vm7, %v2025_v48, %v2053_v57  ;;  %v2541_v10 = vmul.f32 %v2430_v60, %v526_v29 }
 0x206   :  { %3459 = vst [vmem:[#allocation100_spill] sm:$0xff] %v2510_v51  ;;  %v2512_v8 = vpop.permute.xlu0 %740  ;;  %v2531_v51 = vmul.f32 %v2421_v26, %v599_v22  ;;  %v433_v57 = vsel %vm432_vm7, %v2051_v56, %v2063_v61  ;;  %3461 = vst [vmem:[#allocation102_spill] sm:$0xff] %v2556_v31  ;;  %v2564_v56 = vmul.f32 %v2445_v34, %v441_v25 }
 0x207   :  { %3458 = vst [vmem:[#allocation99_spill] sm:$0xff] %v2508_v58  ;;  %3460 = vst [vmem:[#allocation101_spill] sm:$0xff] %v2512_v8  ;;  %v445_v58 = vsel %vm432_vm7, %v2063_v61, %v2025_v48  ;;  %v2538_v8 = vmul.f32 %v2436_v54, %v522_v14  ;;  %v356_v48 = vsel %vm351_vm4, %v2071_v63, %v2069_v62 }
 0x208   :  { %v2559_v22 = vmul.f32 %v2442_v59, %v445_v58  ;;  %v2567_v61 = vmul.f32 %v2433_v35, %v514_v45  ;;  %v607_v63 = vsel %vm594_vm5, %v2077_v2, %v2001_v41  ;;  %v604_v46 = vsel %vm594_vm5, %v2097_v9, %v2165_v42 }
 0x209   :  { %v593_v14 = vpop.permute.xlu1 %592  ;;  %v609_v58 = vsel %vm594_vm5, %v2303_v15, %v2199_v32  ;;  %v2585_v45 = vmul.f32 %v2455_v30, %v356_v48  ;;  %v2588_v41 = vmul.f32 %v2462_v16, %v360_v38  ;;  %v2591_v31 = vmul.f32 %v2459_v21, %v433_v57 }
 0x20a   :  { %v2561_v29 = vpop.permute.xlu0 %724  ;;  %v610_v25 = vsel %vm594_vm5, %v593_v14, %v2340_v43  ;;  %v2597_v18 = vsel %vm594_vm5, %v2019_v47, %v2077_v2  ;;  %v2603_v43 = vsel %vm351_vm4, %v2069_v62, %v2079_v3  ;;  %v608_v32 = vsel %vm594_vm5, %v2131_v19, %v2097_v9  ;;  %v1637_v9 = vld [vmem:[%s3275_s2 + $0x20] ss:$0 sm:$0xff] }
 0x20b   :  { %3462 = vst [vmem:[#allocation103_spill] sm:$0xff] %v2561_v29  ;;  %v639_v29 = vmul.f32 %v614_v1, %v610_v25  ;;  %v636_v57 = vmul.f32 %v2387_v12, %v2242_v33  ;;  %v627_v48 = vmul.f32 %v614_v1, %v607_v63  ;;  %v2615_v47 = vsel %vm351_vm4, %v2079_v3, %v2041_v52  ;;  %v1638_v33 = vld [vmem:[%s3275_s2 + $0x28] ss:$0 sm:$0xff] }
 0x20c   :  { %v632_v2 = vmul.f32 %v2387_v12, %v604_v46  ;;  %v635_v38 = vmul.f32 %v614_v1, %v609_v58  ;;  %v925_v52 = vsel %vm918_vm8, %v2317_v7, %v2205_v55  ;;  %v929_v3 = vsel %vm918_vm8, %v2213_v39, %v2317_v7 }
 0x20d   :  { %v901_v62 = vpop.permute.xlu1 %900  ;;  %1017 = vmatpush1.msra.mxu0 %v639_v29  ;;  %v631_v63 = vmul.f32 %v614_v1, %v608_v32  ;;  %v525_v46 = vsel %vm513_vm6, %v2338_v23, %v2417_v28  ;;  %v923_v7 = vsel %vm918_vm8, %v2085_v4, %v1999_v40  ;;  %v924_v1 = vsel %vm918_vm8, %v2178_v6, %v2105_v11  ;;  %v3465_v11 = vld [vmem:[#allocation73_spill] sm:$0xff] }
 0x20e   :  { %v2618_v25 = vpop.permute.xlu0 %665  ;;  %v926_v12 = vsel %vm918_vm8, %v901_v62, %v2344_v37  ;;  %v930_v29 = vsel %vm918_vm8, %v2348_v20, %v901_v62  ;;  %1018 = vmatprep.subr.mxu0 %v636_v57  ;;  %v927_v62 = vsel %vm918_vm8, %v2009_v44, %v2085_v4  ;;  %v928_v32 = vsel %vm918_vm8, %v2113_v13, %v2178_v6  ;;  %v3463_v57 = vld [vmem:[#allocation33_spill] sm:$0xff]  ;;  %v3464_v44 = vld [vmem:[#allocation54_spill] sm:$0xff]  ;;  %v3468_v13 = vld [vmem:[#allocation76_spill] sm:$0xff] }
 0x20f   :  { %v963_v58 = vmul.f32 %v1637_v9, %v930_v29  ;;  %v964_v55 = vmul.f32 %v1638_v33, %v926_v12  ;;  %1019 = vmatpush1.msra.mxu0 %v635_v38  ;;  %v523_v38 = vsel %vm513_vm6, %v3463_v57, %v2139_v24  ;;  %v959_v12 = vmul.f32 %v1637_v9, %v929_v3 }
 0x210   :  { %1020 = vmatprep.subr.mxu0 %v632_v2  ;;  %v960_v29 = vmul.f32 %v1638_v33, %v925_v52  ;;  %v528_v39 = vsel %vm513_vm6, %v3465_v11, %v3464_v44  ;;  %v559_v6 = vmul.f32 %v2436_v54, %v525_v46  ;;  %v956_v52 = vmul.f32 %v1638_v33, %v924_v1  ;;  %v3467_v11 = vld [vmem:[#allocation61_spill] sm:$0xff] }
 0x211   :  { %1129 = vmatprep.subr.mxu1 %v964_v55  ;;  %v2664_v4 = vpop.permute.xlu1 %511  ;;  %1021 = vmatpush1.msra.mxu0 %v631_v63  ;;  %v955_v55 = vmul.f32 %v1637_v9, %v928_v32  ;;  %v3466_v63 = vld [vmem:[#allocation51_spill] sm:$0xff]  ;;  %v555_v46 = vmul.f32 %v2436_v54, %v3467_v11  ;;  %v952_v32 = vmul.f32 %v1638_v33, %v923_v7  ;;  %v3471_v33 = vld [vmem:[#allocation56_spill] sm:$0xff] }
 0x212   :  { %v2666_v40 = vpop.permute.xlu0 %649  ;;  %v529_v2 = vsel %vm513_vm6, %v2664_v4, %v2338_v23  ;;  %1022 = vmatprep.subr.mxu0 %v628_v53  ;;  %1130 = vmatpush1.msra.mxu1 %v963_v58  ;;  %v527_v44 = vsel %vm513_vm6, %v3466_v63, %v3463_v57  ;;  %v598_v23 = vsel %vm594_vm5, %v3468_v13, %v593_v14  ;;  %v3469_v57 = vld [vmem:[#allocation34_spill] sm:$0xff]  ;;  %v3478_v11 = vld [vmem:[#allocation27_spill] sm:$0xff] }
 0x213   :  { %v558_v3 = vmul.f32 %v2430_v60, %v529_v2  ;;  %1023 = vmatpush1.msra.mxu0 %v627_v48  ;;  %1131 = vmatprep.subr.mxu1 %v960_v29  ;;  %v951_v53 = vmul.f32 %v1637_v9, %v927_v62  ;;  %v554_v58 = vmul.f32 %v2430_v60, %v528_v39  ;;  %v3470_v14 = vld [vmem:[#allocation86_spill] sm:$0xff]  ;;  %v3476_v2 = vld [vmem:[#allocation31_spill] sm:$0xff] }
 0x214   :  { %1024 = vmatprep.subr.mxu0 %v559_v6  ;;  %1132 = vmatpush1.msra.mxu1 %v959_v12  ;;  %v596_v29 = vsel %vm594_vm5, %v3469_v57, %v2131_v19  ;;  %v602_v9 = vsel %vm594_vm5, %v3470_v14, %v3468_v13  ;;  %v551_v39 = vmul.f32 %v2436_v54, %v523_v38  ;;  %v2708_v19 = vld [vmem:[#allocation3 + $0x10] sm:$0xff]  ;;  %v3473_v13 = vld [vmem:[#allocation95_spill] sm:$0xff]  ;;  %v3474_v54 = vld [vmem:[#allocation78_spill] sm:$0xff] }
 0x215   :  { %1133 = vmatprep.subr.mxu1 %v956_v52  ;;  %v2688_v48 = vpop.permute.xlu1 %742  ;;  %1025 = vmatpush1.msra.mxu0 %v558_v3  ;;  %v550_v62 = vmul.f32 %v2430_v60, %v527_v44  ;;  %v597_v7 = vsel %vm594_vm5, %v3471_v33, %v2303_v15  ;;  %v642_v12 = vmul.f32 %v2475_v17, %v598_v23  ;;  %v3475_v38 = vld [vmem:[#allocation30_spill] sm:$0xff]  ;;  %v3477_v3 = vld [vmem:[#allocation97_spill] sm:$0xff] }
 0x216   :  { %v2690_v1 = vpop.permute.xlu0 %414  ;;  %1026 = vmatprep.subr.mxu0 %v555_v46  ;;  %1134 = vmatpush1.msra.mxu1 %v955_v55  ;;  %3472 = vst [vmem:[#allocation33_spill] sm:$0xff] %v2708_v19  ;;  %v2712_v6 = vmul.f32 %v3473_v13, %v2615_v47  ;;  %v630_v15 = vmul.f32 %v2475_v17, %v2597_v18 }
 0x217   :  { %1027 = vmatpush1.msra.mxu0 %v554_v58  ;;  %1135 = vmatprep.subr.mxu1 %v952_v32  ;;  %v444_v60 = vsel %vm432_vm7, %v3474_v54, %v2690_v1  ;;  %v842_v55 = vsel %vm837_vm9, %v3476_v2, %v3475_v38  ;;  %v641_v52 = vmul.f32 %v2421_v26, %v602_v9  ;;  %v3479_v58 = vld [vmem:[#allocation59_spill] sm:$0xff]  ;;  %v3480_v9 = vld [vmem:[#allocation38_spill] sm:$0xff] }
 0x218   :  { %1028 = vmatprep.subr.mxu0 %v551_v39  ;;  %1136 = vmatpush1.msra.mxu1 %v951_v53  ;;  %v2729_v44 = vmul.f32 %v3477_v3, %v2603_v43  ;;  %v846_v18 = vsel %vm837_vm9, %v3478_v11, %v3476_v2  ;;  %v638_v46 = vmul.f32 %v2475_v17, %v597_v7  ;;  %v3482_v39 = vld [vmem:[#allocation36_spill] sm:$0xff]  ;;  %v3484_v7 = vld [vmem:[#allocation45_spill] sm:$0xff] }
 0x219   :  { %1194 = vmatprep.subr.mxu1 %v642_v12  ;;  %v2725_v47 = vpop.permute.xlu1 %732  ;;  %1029 = vmatpush1.msra.mxu0 %v550_v62  ;;  %v634_v53 = vmul.f32 %v2475_v17, %v596_v29  ;;  %v600_v43 = vsel %vm594_vm5, %v2165_v42, %v3469_v57  ;;  %v637_v32 = vmul.f32 %v2421_v26, %v3479_v58  ;;  %v3481_v29 = vld [vmem:[#allocation44_spill] sm:$0xff] }
 0x21a   :  { %v2736_v23 = vpop.permute.xlu0 %430  ;;  %1030 = vmatprep.subr.mxu0 %v2538_v8  ;;  %1641 = vmatmul.mubr.msk.f32.vlgmr.msra.gmra.mxu1 %vm1003_vm10, %v2708_v19  ;;  %v478_v14 = vmul.f32 %v2445_v34, %v444_v60  ;;  %v519_v17 = vsel %vm513_vm6, %v2139_v24, %v3480_v9  ;;  %v442_v42 = vsel %vm432_vm7, %v3482_v39, %v3481_v29  ;;  %v3483_v62 = vld [vmem:[#allocation96_spill] sm:$0xff] }
 0x21b   :  { %v448_v8 = vsel %vm432_vm7, %v2736_v23, %v3474_v54  ;;  %1195 = vmatpush1.msra.mxu1 %v641_v52  ;;  %1031 = vmatpush1.msra.mxu0 %v2541_v10  ;;  %v2764_v33 = vmul.f32 %v3483_v62, %v846_v18  ;;  %v446_v12 = vsel %vm432_vm7, %v3484_v7, %v3482_v39  ;;  %v3485_v54 = vld [vmem:[#allocation64_spill] sm:$0xff]  ;;  %v3486_v52 = vld [vmem:[#allocation66_spill] sm:$0xff]  ;;  %v3487_v18 = vld [vmem:[#allocation81_spill] sm:$0xff] }
 0x21c   :  { %v477_v57 = vmul.f32 %v2442_v59, %v448_v8  ;;  %1196 = vmatprep.subr.mxu1 %v638_v46  ;;  %v474_v24 = vmul.f32 %v2445_v34, %v3485_v54  ;;  %1032 = vmatprep.subr.mxu0 %v478_v14  ;;  %v633_v2 = vmul.f32 %v2421_v26, %v600_v43  ;;  %v3489_v39 = vld [vmem:[#allocation87_spill] sm:$0xff]  ;;  %v3529_v19 = vld [vmem:[#allocation84_spill] sm:$0xff] }
 0x21d   :  { %1197 = vmatpush1.msra.mxu1 %v637_v32  ;;  %v2772_v60 = vpop.permute.xlu1 %833  ;;  %v473_v10 = vmul.f32 %v2442_v59, %v3486_v52  ;;  %v517_v46 = vsel %vm513_vm6, %v3487_v18, %v2664_v4  ;;  %v552_v8 = vmul.f32 %v2427_v5, %v519_v17  ;;  %v521_v32 = vsel %vm513_vm6, %v2417_v28, %v3487_v18  ;;  %v3488_v4 = vld [vmem:[#allocation91_spill] sm:$0xff]  ;;  %v3491_v28 = vld [vmem:[#allocation42_spill] sm:$0xff]  ;;  %v3496_v18 = vld [vmem:[#allocation60_spill] sm:$0xff] }
 0x21e   :  { %1033 = vmatpush1.msra.mxu0 %v477_v57  ;;  %1198 = vmatprep.subr.mxu1 %v634_v53  ;;  %v2781_v58 = vpop.permute.xlu0 %331  ;;  %v470_v26 = vmul.f32 %v2445_v34, %v442_v42  ;;  %v2790_v43 = vmul.f32 %v2500_v49, %v842_v55  ;;  %v469_v14 = vmul.f32 %v2442_v59, %v446_v12  ;;  %v3490_v57 = vld [vmem:[#allocation83_spill] sm:$0xff]  ;;  %v3492_v59 = vld [vmem:[#allocation89_spill] sm:$0xff] }
 0x21f   :  { %1034 = vmatprep.subr.mxu0 %v474_v24  ;;  %v2795_v53 = vrot.slane %v3489_v39, %v3488_v4  ;;  %v363_v17 = vsel %vm351_vm4, %v3490_v57, %v2781_v58  ;;  %1199 = vmatpush1.msra.mxu1 %v633_v2  ;;  %v438_v34 = vsel %vm432_vm7, %v3481_v29, %v3491_v28  ;;  %v3556_v36 = vld [vmem:[#allocation33_spill] sm:$0xff] }
 0x220   :  { %1035 = vmatpush1.msra.mxu0 %v473_v10  ;;  %v561_v55 = vmul.f32 %v2433_v35, %v517_v46  ;;  %v2808_v42 = vrot.slane %v3492_v59, %v3488_v4  ;;  %1200 = vmatprep.subr.mxu1 %v630_v15  ;;  %v434_v54 = vsel %vm432_vm7, %v3491_v28, %v3484_v7  ;;  %v3493_v15 = vld [vmem:[#allocation75_spill] sm:$0xff]  ;;  %v3498_v4 = vld [vmem:[#allocation48_spill] sm:$0xff] }
 0x221   :  { %1036 = vmatprep.subr.mxu0 %v470_v26  ;;  %v2810_v12 = vpop.permute.xlu1 %655  ;;  %v515_v29 = vsel %vm513_vm6, %v3480_v9, %v3466_v63  ;;  %v560_v24 = vmul.f32 %v2427_v5, %v521_v32  ;;  %1201 = vmatpush1.msra.mxu1 %v2531_v51  ;;  %v557_v52 = vmul.f32 %v2433_v35, %v3493_v15  ;;  %v3494_v63 = vld [vmem:[#allocation46_spill] sm:$0xff]  ;;  %v3495_v9 = vld [vmem:[#allocation41_spill] sm:$0xff]  ;;  %v3497_v26 = vld [vmem:[#allocation80_spill] sm:$0xff] }
 0x222   :  { %1037 = vmatpush1.msra.mxu0 %v469_v14  ;;  %v2822_v2 = vpop.permute.xlu0 %347  ;;  %v397_v10 = vmul.f32 %v2462_v16, %v363_v17  ;;  %1202 = vmatprep.subr.mxu1 %v561_v55  ;;  %v361_v51 = vsel %vm351_vm4, %v3495_v9, %v3494_v63  ;;  %v556_v46 = vmul.f32 %v2427_v5, %v3496_v18  ;;  %v2841_v14 = vsub.s32 5, %v3497_v26  ;;  %v3499_v17 = vld [vmem:[#allocation69_spill] sm:$0xff] }
 0x223   :  { %v367_v7 = vsel %vm351_vm4, %v2822_v2, %v3490_v57  ;;  %1038 = vmatprep.subr.mxu0 %v2564_v56  ;;  %1203 = vmatpush1.msra.mxu1 %v560_v24  ;;  %v365_v56 = vsel %vm351_vm4, %v3498_v4, %v3495_v9  ;;  %v553_v57 = vmul.f32 %v2433_v35, %v515_v29  ;;  %v3501_v15 = vld [vmem:[#allocation85_spill] sm:$0xff] }
 0x224   :  { %v396_v32 = vmul.f32 %v3473_v13, %v367_v7  ;;  %1039 = vmatpush1.msra.mxu0 %v2559_v22  ;;  %v393_v28 = vmul.f32 %v2462_v16, %v3499_v17  ;;  %1204 = vmatprep.subr.mxu1 %v557_v52  ;;  %v471_v55 = vmul.f32 %v2439_v27, %v438_v34  ;;  %v3500_v22 = vld [vmem:[#allocation71_spill] sm:$0xff]  ;;  %v3509_v17 = vld [vmem:[#allocation72_spill] sm:$0xff] }
 0x225   :  { %1040 = vmatprep.subr.mxu0 %v397_v10  ;;  %v2850_v5 = vpop.permute.xlu1 %831  ;;  %v392_v24 = vmul.f32 %v3473_v13, %v3500_v22  ;;  %v436_v7 = vsel %vm432_vm7, %v3501_v15, %v2736_v23  ;;  %1205 = vmatpush1.msra.mxu1 %v556_v46  ;;  %v472_v29 = vmul.f32 %v2459_v21, %v434_v54  ;;  %v3502_v10 = vld [vmem:[#allocation47_spill] sm:$0xff]  ;;  %v3504_v54 = vld [vmem:[#allocation50_spill] sm:$0xff] }
 0x226   :  { %1041 = vmatpush1.msra.mxu0 %v396_v32  ;;  %v2859_v35 = vpop.permute.xlu0 %663  ;;  %v389_v52 = vmul.f32 %v2462_v16, %v361_v51  ;;  %v440_v34 = vsel %vm432_vm7, %v2690_v1, %v3501_v15  ;;  %1206 = vmatprep.subr.mxu1 %v553_v57  ;;  %v2869_v63 = vmul.f32 %v2455_v30, %v3502_v10  ;;  %v3503_v16 = vld [vmem:[#allocation43_spill] sm:$0xff]  ;;  %v3507_v32 = vld [vmem:[#allocation65_spill] sm:$0xff]  ;;  %v3508_v57 = vld [vmem:[#allocation62_spill] sm:$0xff] }
 0x227   :  { %1042 = vmatprep.subr.mxu0 %v393_v28  ;;  %v388_v23 = vmul.f32 %v3473_v13, %v365_v56  ;;  %v2874_v9 = vrot.slane %v2381_v0, %v2841_v14  ;;  %1207 = vmatpush1.msra.mxu1 %v552_v8  ;;  %v843_v51 = vsel %vm837_vm9, %v3504_v54, %v3503_v16  ;;  %v3505_v1 = vld [vmem:[#allocation39_spill] sm:$0xff]  ;;  %v3510_v28 = vld [vmem:[#allocation90_spill] sm:$0xff] }
 0x228   :  { %1043 = vmatpush1.msra.mxu0 %v392_v24  ;;  %v847_v18 = vsel %vm837_vm9, %v3505_v1, %v3504_v54  ;;  %v480_v46 = vmul.f32 %v2459_v21, %v436_v7  ;;  %1208 = vmatprep.subr.mxu1 %v2567_v61  ;;  %v3506_v0 = vld [vmem:[#allocation63_spill] sm:$0xff]  ;;  %v476_v26 = vmul.f32 %v2459_v21, %v3507_v32  ;;  %v3511_v24 = vld [vmem:[#allocation82_spill] sm:$0xff]  ;;  %v3514_v54 = vmov 0.0  }
 0x229   :  { %1044 = vmatprep.subr.mxu0 %v389_v52  ;;  %v2886_v13 = vpop.permute.xlu1 %653  ;;  %v475_v8 = vmul.f32 %v2439_v27, %v3506_v0  ;;  %v479_v4 = vmul.f32 %v2439_v27, %v440_v34  ;;  %1209 = vmatpush1.msra.mxu1 %v2534_v50  ;;  %v844_v61 = vsel %vm837_vm9, %v3509_v17, %v3508_v57  ;;  %v3512_v27 = vld [vmem:[#allocation57_spill] sm:$0xff] }
 0x22a   :  { %1045 = vmatpush1.msra.mxu0 %v388_v23  ;;  %v820_v56 = vpop.permute.xlu0 %819  ;;  %1210 = vmatprep.subr.mxu1 %v480_v46  ;;  %v848_v50 = vsel %vm837_vm9, %v3512_v27, %v3509_v17  ;;  %v3513_v52 = vld [vmem:[#allocation49_spill] sm:$0xff]  ;;  %v874_v10 = vmul.f32 %v3483_v62, %v847_v18  ;;  %v875_v23 = vmul.f32 %v2500_v49, %v843_v51  ;;  %v3516_v18 = vld [vmem:[#allocation88_spill] sm:$0xff]  ;;  %v3519_v17 = vld [vmem:[#allocation74_spill] sm:$0xff] }
 0x22b   :  { %v845_v22 = vsel %vm837_vm9, %v820_v56, %v3510_v28  ;;  %v849_v21 = vsel %vm837_vm9, %v3511_v24, %v820_v56  ;;  %1046 = vmatprep.subr.mxu0 %v2588_v41  ;;  %1211 = vmatpush1.msra.mxu1 %v479_v4  ;;  %v391_v34 = vmul.f32 %v3477_v3, %v3513_v52  ;;  %v3515_v0 = vld [vmem:[#allocation93_spill] sm:$0xff]  ;;  %v3517_v4 = vld [vmem:[#allocation92_spill] sm:$0xff]  ;;  %v3524_v52 = vld [vmem:[#allocation94_spill] sm:$0xff] }
 0x22c   :  { %v882_v15 = vmul.f32 %v3483_v62, %v849_v21  ;;  %v883_v7 = vmul.f32 %v2500_v49, %v845_v22  ;;  %1047 = vmatpush1.msra.mxu0 %v2712_v6  ;;  %1212 = vmatprep.subr.mxu1 %v476_v26  ;;  %v879_v46 = vmul.f32 %v2500_v49, %v844_v61  ;;  %v3520_v61 = vld [vmem:[#allocation58_spill] sm:$0xff]  ;;  %v3522_v21 = vld [vmem:[#allocation67_spill] sm:$0xff] }
 0x22d   :  { %v2917_v41 = vpop.permute.xlu1 %829  ;;  %1175 = vmatprep.mubr.f32.mxu1 %v3514_v54  ;;  %v355_v6 = vsel %vm351_vm4, %v3515_v0, %v2822_v2  ;;  %1213 = vmatpush1.msra.mxu1 %v475_v8  ;;  %v2927_v32 = vrot.slane %v3516_v18, %v2841_v14  ;;  %v878_v26 = vmul.f32 %v3483_v62, %v848_v50  ;;  %v3518_v8 = vld [vmem:[#allocation68_spill] sm:$0xff] }
 0x22e   :  { %1048 = vmatprep.subr.mxu0 %v883_v7  ;;  %v2929_v51 = vpop.permute.xlu0 %647  ;;  %v359_v49 = vsel %vm351_vm4, %v2781_v58, %v3515_v0  ;;  %1214 = vmatprep.subr.mxu1 %v472_v29  ;;  %v2938_v2 = vrot.slane %v3489_v39, %v3517_v4  ;;  %v394_v56 = vmul.f32 %v2455_v30, %v3518_v8  ;;  %v3521_v58 = vld [vmem:[#allocation70_spill] sm:$0xff] }
 0x22f   :  { %1049 = vmatpush2.msra.mxu0 %v882_v15  ;;  %v767_v22 = vsel %vm756_vm11, %v3520_v61, %v3519_v17  ;;  %1215 = vmatpush1.msra.mxu1 %v471_v55  ;;  %v2948_v62 = vrot.slane %v3492_v59, %v3517_v4  ;;  %v395_v29 = vmul.f32 %v3477_v3, %v3521_v58  ;;  %v3523_v55 = vld [vmem:[#allocation52_spill] sm:$0xff]  ;;  %v3525_v4 = vld [vmem:[#allocation102_spill] sm:$0xff] }
 0x230   :  { %1050 = vmatprep.subr.mxu0 %v879_v46  ;;  %v763_v50 = vsel %vm756_vm11, %v3519_v17, %v3522_v21  ;;  %v399_v15 = vmul.f32 %v3477_v3, %v355_v6  ;;  %1216 = vmatprep.subr.mxu1 %v2591_v31  ;;  %v766_v46 = vsel %vm756_vm11, %v3524_v52, %v3523_v55  ;;  %v3526_v6 = vld [vmem:[#allocation98_spill] sm:$0xff]  ;;  %v3528_v17 = vld [vmem:[#allocation100_spill] sm:$0xff] }
 0x231   :  { %1051 = vmatpush2.msra.mxu0 %v878_v26  ;;  %v836_v7 = vpop.permute.xlu1 %835  ;;  %v762_v0 = vsel %vm756_vm11, %v3523_v55, %v2688_v48  ;;  %v398_v18 = vmul.f32 %v2455_v30, %v359_v49  ;;  %1217 = vmatpush1.msra.mxu1 %v3525_v4  ;;  %v797_v31 = vmul.f32 %v3526_v6, %v767_v22  ;;  %v3527_v26 = vld [vmem:[#allocation101_spill] sm:$0xff]  ;;  %v3530_v49 = vld [vmem:[#allocation103_spill] sm:$0xff] }
 0x232   :  { %1052 = vmatprep.subr.mxu0 %v875_v23  ;;  %v739_v3 = vpop.permute.xlu0 %738  ;;  %v761_v8 = vsel %vm756_vm11, %v2725_v47, %v3527_v26  ;;  %1218 = vmatprep.subr.mxu1 %v399_v15  ;;  %v765_v23 = vsel %vm756_vm11, %v3530_v49, %v2725_v47  ;;  %v3531_v55 = vld [vmem:[#allocation99_spill] sm:$0xff]  ;;  %v793_v20 = vmul.f32 %v3526_v6, %v766_v46 }
 0x233   :  { %v764_v58 = vsel %vm756_vm11, %v739_v3, %v3528_v17  ;;  %v768_v30 = vsel %vm756_vm11, %v3529_v19, %v739_v3  ;;  %1053 = vmatpush2.msra.mxu0 %v874_v10  ;;  %1219 = vmatpush1.msra.mxu1 %v398_v18  ;;  %v798_v15 = vmul.f32 %v3531_v55, %v763_v50 }
 0x234   :  { %v801_v22 = vmul.f32 %v3526_v6, %v768_v30  ;;  %v802_v4 = vmul.f32 %v3531_v55, %v764_v58  ;;  %v794_v37 = vmul.f32 %v3531_v55, %v762_v0  ;;  %1054 = vmatprep.subr.mxu0 %v2790_v43  ;;  %1220 = vmatprep.subr.mxu1 %v395_v29 }
 0x235   :  { %v658_v3 = vpop.permute.xlu1 %657  ;;  %v840_v47 = vsel %vm837_vm9, %v3508_v57, %v2772_v60  ;;  %v852_v10 = vsel %vm837_vm9, %v2772_v60, %v3512_v27  ;;  %v853_v50 = vsel %vm837_vm9, %v836_v7, %v3511_v24  ;;  %1055 = vmatpush2.msra.mxu0 %v2764_v33  ;;  %1221 = vmatpush1.msra.mxu1 %v394_v56 }
 0x236   :  { %v3002_v43 = vpop.permute.xlu0 %661  ;;  %v789_v29 = vmul.f32 %v3526_v6, %v765_v23  ;;  %v790_v46 = vmul.f32 %v3531_v55, %v761_v8  ;;  %v841_v57 = vsel %vm837_vm9, %v3510_v28, %v836_v7  ;;  %1056 = vmatprep.subr.mxu0 %v802_v4  ;;  %1222 = vmatprep.subr.mxu1 %v391_v34 }
 0x237   :  { %v839_v60 = vsel %vm837_vm9, %v3503_v16, %v2850_v5  ;;  %v851_v33 = vsel %vm837_vm9, %v2850_v5, %v3505_v1  ;;  %v682_v24 = vsel %vm675_vm12, %v2810_v12, %v2859_v35  ;;  %1057 = vmatpush2.msra.mxu0 %v801_v22  ;;  %1223 = vmatpush1.msra.mxu1 %v2869_v63 }
 0x238   :  { %v880_v28 = vmul.f32 %v2795_v53, %v840_v47  ;;  %v881_v27 = vmul.f32 %v2808_v42, %v852_v10  ;;  %v885_v34 = vmul.f32 %v2808_v42, %v853_v50  ;;  %1058 = vmatprep.subr.mxu0 %v798_v15  ;;  %1224 = vmatprep.subr.mxu1 %v2729_v44 }
 0x239   :  { %v652_v16 = vpop.permute.xlu1 %651  ;;  %v884_v5 = vmul.f32 %v2795_v53, %v841_v57  ;;  %v683_v1 = vsel %vm675_vm12, %v658_v3, %v2618_v25  ;;  %v687_v63 = vsel %vm675_vm12, %v2666_v40, %v658_v3  ;;  %1059 = vmatpush2.msra.mxu0 %v797_v31  ;;  %1225 = vmatpush1.msra.mxu1 %v2585_v45 }
 0x23a   :  { %v3034_v56 = vpop.permute.xlu0 %645  ;;  %v876_v7 = vmul.f32 %v2795_v53, %v839_v60  ;;  %v877_v44 = vmul.f32 %v2808_v42, %v851_v33  ;;  %v717_v0 = vmul.f32 %v2874_v9, %v682_v24  ;;  %1060 = vmatprep.subr.mxu0 %v794_v37  ;;  %1226 = vmatprep.subr.mxu1 %v885_v34  ;;  %v3532_v33 = vld [vmem:[#allocation32_spill] sm:$0xff] }
 0x23b   :  { %v838_v18 = vsel %vm837_vm9, %v3475_v38, %v2917_v41  ;;  %v850_v45 = vsel %vm837_vm9, %v2917_v41, %v3478_v11  ;;  %v686_v6 = vsel %vm675_vm12, %v2929_v51, %v2810_v12  ;;  %1061 = vmatpush2.msra.mxu0 %v793_v20  ;;  %1227 = vmatpush2.msra.mxu1 %v884_v5 }
 0x23c   :  { %v720_v37 = vmul.f32 %v2927_v32, %v687_v63  ;;  %v721_v31 = vmul.f32 %v2874_v9, %v683_v1  ;;  %v681_v38 = vsel %vm675_vm12, %v2886_v13, %v3002_v43  ;;  %1062 = vmatprep.subr.mxu0 %v790_v46  ;;  %1228 = vmatprep.subr.mxu1 %v881_v27  ;;  %v3533_v27 = vld [vmem:[#allocation28_spill] sm:$0xff] }
 0x23d   :  { %v755_v8 = vpop.permute.xlu1 %754  ;;  %v685_v11 = vsel %vm675_vm12, %v3034_v56, %v2886_v13  ;;  %1063 = vmatpush2.msra.mxu0 %v789_v29  ;;  %1229 = vmatpush2.msra.mxu1 %v880_v28  ;;  %v873_v58 = vmul.f32 %v2808_v42, %v850_v45  ;;  %v872_v23 = vmul.f32 %v2795_v53, %v838_v18  ;;  %v3091_v29 = vld [vmem:[#allocation3 + $0x28] sm:$0xff]  ;;  %v3536_v63 = vld [vmem:[#allocation20_spill] sm:$0xff]  ;;  %v3539_v18 = vld [vmem:[#allocation13_spill] sm:$0xff] }
 0x23e   :  { %v760_v20 = vsel %vm756_vm11, %v3528_v17, %v755_v8  ;;  %v772_v12 = vsel %vm756_vm11, %v755_v8, %v3529_v19  ;;  %v3067_v41 = vpop.permute.xlu0 %659  ;;  %1064 = vmatprep.subr.mxu0 %v721_v31  ;;  %1230 = vmatprep.subr.mxu1 %v877_v44  ;;  %v716_v17 = vmul.f32 %v2927_v32, %v686_v6  ;;  %v3537_v44 = vld [vmem:[#allocation17_spill] sm:$0xff]  ;;  %v3138_v45 = vld [vmem:[#allocation3 + $0x20] sm:$0xff] }
 0x23f   :  { %v804_v30 = vmul.f32 %v2948_v62, %v772_v12  ;;  %v680_v13 = vsel %vm675_vm12, %v652_v16, %v3067_v41  ;;  %v803_v22 = vmul.f32 %v2938_v2, %v760_v20  ;;  %1065 = vmatpush2.msra.mxu0 %v720_v37  ;;  %1231 = vmatpush2.msra.mxu1 %v876_v7  ;;  %v1639_v12 = vld [vmem:[%s3275_s2 + $0x30] ss:$0 sm:$0xff] }
 0x240   :  { %v713_v19 = vmul.f32 %v2874_v9, %v681_v38  ;;  %v712_v42 = vmul.f32 %v2927_v32, %v685_v11  ;;  %1066 = vmatprep.subr.mxu0 %v717_v0  ;;  %1232 = vmatprep.subr.mxu1 %v873_v58  ;;  %v709_v4 = vmul.f32 %v2874_v9, %v680_v13  ;;  %v3161_v13 = vld [vmem:[#allocation3 + $0x40] sm:$0xff] }
 0x241   :  { %v753_v55 = vpop.permute.xlu1 %752  ;;  %1067 = vmatpush2.msra.mxu0 %v716_v17  ;;  %1233 = vmatpush2.msra.mxu1 %v872_v23  ;;  %v703_v46 = vrot.slane %v3489_v39, %v2841_v14  ;;  %v707_v24 = vrot.slane %v3492_v59, %v2841_v14  ;;  %v3535_v14 = vld [vmem:[#allocation21_spill] sm:$0xff] }
 0x242   :  { %v759_v53 = vsel %vm756_vm11, %v3522_v21, %v753_v55  ;;  %v771_v15 = vsel %vm756_vm11, %v753_v55, %v3520_v61  ;;  %v644_v3 = vpop.permute.xlu0 %643  ;;  %1068 = vmatprep.subr.mxu0 %v713_v19  ;;  %1234 = vmatprep.subr.mxu1 %v804_v30 }
 0x243   :  { %v799_v47 = vmul.f32 %v2938_v2, %v759_v53  ;;  %v800_v10 = vmul.f32 %v2948_v62, %v771_v15  ;;  %v684_v9 = vsel %vm675_vm12, %v644_v3, %v652_v16  ;;  %1069 = vmatpush2.msra.mxu0 %v712_v42  ;;  %1235 = vmatpush2.msra.mxu1 %v803_v22  ;;  %v3541_v22 = vld [vmem:[#allocation79_spill] sm:$0xff]  ;;  %v974_v42 = vld [vmem:[#allocation3 + $0x38] sm:$0xff]  ;;  %v973_v15 = vld [vmem:[#allocation3 + $0x30] sm:$0xff] }
 0x244   :  { %v708_v50 = vmul.f32 %v2927_v32, %v684_v9  ;;  %1070 = vmatprep.subr.mxu0 %v709_v4  ;;  %1642 = vmatmul.mubr.msk.f32.gmra.mxu1 %vm1003_vm10, %v3091_v29  ;;  %v3543_v9 = vld [vmem:[#allocation53_spill] sm:$0xff] }
 0x245   :  { %v749_v21 = vpop.permute.xlu1 %748  ;;  %1236 = vmatprep.subr.mxu1 %v800_v10  ;;  %1181 = vmatprep.mubr.f32.mxu1 %v3514_v54 }
 0x246   :  { %1071 = vmatpush2.msra.mxu0 %v708_v50  ;;  %v751_v61 = vpop.permute.xlu0 %750  ;;  %1237 = vmatpush2.msra.mxu1 %v799_v47  ;;  %v757_v57 = vsel %vm756_vm11, %v3527_v26, %v749_v21  ;;  %v769_v39 = vsel %vm756_vm11, %v749_v21, %v3530_v49  ;;  %v3544_v21 = vld [vmem:[#allocation40_spill] sm:$0xff] }
 0x247   :  { %v758_v32 = vsel %vm756_vm11, %v2688_v48, %v751_v61  ;;  %v770_v60 = vsel %vm756_vm11, %v751_v61, %v3524_v52  ;;  %1072 = vmatprep.subr.mxu0 %v3532_v33  ;;  %v3534_v48 = vld [vmem:[#allocation23_spill] sm:$0xff]  ;;  %v791_v59 = vmul.f32 %v2938_v2, %v757_v57  ;;  %v792_v34 = vmul.f32 %v2948_v62, %v769_v39  ;;  %v978_v61 = vld [vmem:[#allocation3 + $0x58] sm:$0xff] }
 0x248   :  { %v795_v28 = vmul.f32 %v2938_v2, %v758_v32  ;;  %v796_v26 = vmul.f32 %v2948_v62, %v770_v60  ;;  %1073 = vmatpush2.msra.mxu0 %v3533_v27  ;;  %1643 = vmatmul.mubr.msk.f32.gmra.mxu1 %vm1003_vm10, %v3161_v13  ;;  %v3545_v57 = vld [vmem:[#allocation35_spill] sm:$0xff]  ;;  %v3546_v60 = vld [vmem:[#allocation37_spill] sm:$0xff] }
 0x249   :  { %1074 = vmatprep.subr.mxu0 %v3534_v48  ;;  %v672_v52 = vpop.permute.xlu1 %671  ;;  %1187 = vmatprep.mubr.f32.mxu1 %v3514_v54  ;;  %v3548_v48 = vld [vmem:[#allocation25_spill] sm:$0xff] }
 0x24a   :  { %1075 = vmatpush2.msra.mxu0 %v3535_v14  ;;  %1238 = vmatprep.subr.mxu1 %v796_v26  ;;  %v674_v49 = vpop.permute.xlu0 %673  ;;  %v678_v16 = vsel %vm675_vm12, %v2859_v35, %v672_v52  ;;  %v690_v2 = vsel %vm675_vm12, %v672_v52, %v2929_v51  ;;  %v3538_v35 = vld [vmem:[#allocation15_spill] sm:$0xff]  ;;  %v977_v26 = vld [vmem:[#allocation3 + $0x50] sm:$0xff]  ;;  %v3549_v52 = vld [vmem:[#allocation26_spill] sm:$0xff] }
 0x24b   :  { %v679_v5 = vsel %vm675_vm12, %v2618_v25, %v674_v49  ;;  %v691_v1 = vsel %vm675_vm12, %v674_v49, %v2666_v40  ;;  %1076 = vmatprep.subr.mxu0 %v3536_v63  ;;  %1239 = vmatpush2.msra.mxu1 %v795_v28  ;;  %v3135_v25 = vld [vmem:[#allocation3] sm:$0xff]  ;;  %v718_v6 = vmul.f32 %v703_v46, %v678_v16  ;;  %v3547_v28 = vld [vmem:[#allocation29_spill] sm:$0xff]  ;;  %v3551_v16 = vld [vmem:[#allocation24_spill] sm:$0xff] }
 0x24c   :  { %v722_v7 = vmul.f32 %v703_v46, %v679_v5  ;;  %v723_v62 = vmul.f32 %v707_v24, %v691_v1  ;;  %1077 = vmatpush2.msra.mxu0 %v3537_v44  ;;  %1240 = vmatprep.subr.mxu1 %v792_v34  ;;  %v719_v37 = vmul.f32 %v707_v24, %v690_v2  ;;  %v3550_v49 = vld [vmem:[#allocation22_spill] sm:$0xff]  ;;  %v976_v34 = vld [vmem:[#allocation3 + $0x48] sm:$0xff] }
 0x24d   :  { %1078 = vmatprep.subr.mxu0 %v3538_v35  ;;  %v668_v0 = vpop.permute.xlu1 %667  ;;  %1241 = vmatpush2.msra.mxu1 %v791_v59  ;;  %v3552_v1 = vld [vmem:[#allocation19_spill] sm:$0xff]  ;;  %v3553_v2 = vld [vmem:[#allocation18_spill] sm:$0xff] }
 0x24e   :  { %1079 = vmatpush2.msra.mxu0 %v3539_v18  ;;  %v670_v40 = vpop.permute.xlu0 %669  ;;  %1242 = vmatprep.subr.mxu1 %v723_v62  ;;  %v688_v38 = vsel %vm675_vm12, %v668_v0, %v644_v3  ;;  %v676_v20 = vsel %vm675_vm12, %v3067_v41, %v668_v0  ;;  %v3540_v41 = vld [vmem:[#allocation77_spill] sm:$0xff]  ;;  %v3542_v3 = vld [vmem:[#allocation55_spill] sm:$0xff]  ;;  %v3554_v62 = vld [vmem:[#allocation16_spill] sm:$0xff] }
 0x24f   :  { %v677_v51 = vsel %vm675_vm12, %v3002_v43, %v670_v40  ;;  %v689_v31 = vsel %vm675_vm12, %v670_v40, %v3034_v56  ;;  %1081 = vmatmul.mubr.f32.vlgmr.msra.gmra.mxu0 %v3135_v25  ;;  %1243 = vmatpush2.msra.mxu1 %v722_v7  ;;  %v1640_v43 = vld [vmem:[%s3275_s2 + $0x38] ss:$0 sm:$0xff]  ;;  %v711_v23 = vmul.f32 %v707_v24, %v688_v38  ;;  %v3555_v44 = vld [vmem:[#allocation14_spill] sm:$0xff]  ;;  %v1672_v35 = vld [vmem:[#allocation3 + $0x8] sm:$0xff] }
 0x250   :  { %v714_v8 = vmul.f32 %v703_v46, %v677_v51  ;;  %v715_v11 = vmul.f32 %v707_v24, %v689_v31  ;;  %1244 = vmatprep.subr.mxu1 %v719_v37  ;;  %1086 = vmatprep.mubr.f32.mxu0 %v3138_v45  ;;  %v3156_v56 = vld [vmem:[#allocation3 + $0x18] sm:$0xff]  ;;  %v710_v55 = vmul.f32 %v703_v46, %v676_v20 }
 0x251   :  { %1245 = vmatpush2.msra.mxu1 %v718_v6  ;;  %v915_v58 = vpop.permute.xlu1 %914 }
 0x252   :  { %v917_v30 = vpop.permute.xlu0 %916  ;;  %1246 = vmatprep.subr.mxu1 %v715_v11  ;;  %v933_v47 = vsel %vm918_vm8, %v915_v58, %v3542_v3  ;;  %v921_v50 = vsel %vm918_vm8, %v3543_v9, %v915_v58  ;;  %1644 = vmatmul.mubr.msk.f32.gmra.mxu1 %vm1003_vm10, %v978_v61  ;;  %v1385_v58 = vld [vmem:[#allocation6 + $0x68] sm:$0xff] }
 0x253   :  { %v922_v17 = vsel %vm918_vm8, %v3540_v41, %v917_v30  ;;  %v934_v19 = vsel %vm918_vm8, %v917_v30, %v3541_v22  ;;  %1087 = vmatmul.mubr.f32.gmra.mxu0 %v3156_v56  ;;  %1247 = vmatpush2.msra.mxu1 %v714_v8  ;;  %v962_v24 = vmul.f32 %v1640_v43, %v933_v47  ;;  %v1381_v30 = vld [vmem:[#allocation6 + $0x48] sm:$0xff]  ;;  %v1380_v22 = vld [vmem:[#allocation6 + $0x40] sm:$0xff] }
 0x254   :  { %v966_v4 = vmul.f32 %v1640_v43, %v934_v19  ;;  %v965_v53 = vmul.f32 %v1639_v12, %v922_v17  ;;  %1248 = vmatprep.subr.mxu1 %v711_v23  ;;  %1092 = vmatprep.mubr.f32.mxu0 %v974_v42  ;;  %v961_v27 = vmul.f32 %v1639_v12, %v921_v50  ;;  %v1376_v50 = vld [vmem:[#allocation6 + $0x20] sm:$0xff] }
 0x255   :  { %1249 = vmatpush2.msra.mxu1 %v710_v55  ;;  %v911_v46 = vpop.permute.xlu1 %910  ;;  %1258 = vmatprep.mubr.f32.mxu1 %v1672_v35 }
 0x256   :  { %v913_v10 = vpop.permute.xlu0 %912  ;;  %1250 = vmatprep.subr.mxu1 %v3544_v21  ;;  %1307 = vmatprep.subr.mxu0 %v966_v4  ;;  %v931_v59 = vsel %vm918_vm8, %v911_v46, %v3549_v52  ;;  %v919_v5 = vsel %vm918_vm8, %v3551_v16, %v911_v46  ;;  %v3557_v4 = vld [vmem:[#allocation12_spill] sm:$0xff] }
 0x257   :  { %v920_v32 = vsel %vm918_vm8, %v3545_v57, %v913_v10  ;;  %v932_v33 = vsel %vm918_vm8, %v913_v10, %v3546_v60  ;;  %1093 = vmatmul.mubr.f32.gmra.mxu0 %v973_v15  ;;  %1251 = vmatpush2.msra.mxu1 %v3547_v28  ;;  %v954_v63 = vmul.f32 %v1640_v43, %v931_v59  ;;  %v1377_v10 = vld [vmem:[#allocation6 + $0x28] sm:$0xff] }
 0x258   :  { %v958_v39 = vmul.f32 %v1640_v43, %v932_v33  ;;  %1308 = vmatpush1.msra.mxu0 %v965_v53  ;;  %1252 = vmatprep.subr.mxu1 %v3548_v48  ;;  %v957_v14 = vmul.f32 %v1639_v12, %v920_v32  ;;  %v953_v7 = vmul.f32 %v1639_v12, %v919_v5  ;;  %v1384_v12 = vld [vmem:[#allocation6 + $0x60] sm:$0xff] }
 0x259   :  { %1309 = vmatprep.subr.mxu0 %v962_v24  ;;  %1253 = vmatpush2.msra.mxu1 %v3550_v49  ;;  %v1400_v53 = vmul.f32 %v1384_v12, %v3557_v4  ;;  %v1401_v3 = vmul.f32 %v1385_v58, %v3557_v4  ;;  %v1397_v47 = vmul.f32 %v1381_v30, %v3557_v4  ;;  %v1373_v24 = vld [vmem:[#allocation6 + $0x8] sm:$0xff]  ;;  %v1372_v48 = vld [vmem:[#allocation6] sm:$0xff]  ;;  %v1383_v30 = vld [vmem:[#allocation6 + $0x58] sm:$0xff] }
 0x25a   :  { %1310 = vmatpush1.msra.mxu0 %v961_v27  ;;  %1098 = vmatprep.mubr.f32.mxu0 %v977_v26  ;;  %v1396_v60 = vmul.f32 %v1380_v22, %v3557_v4  ;;  %v1393_v27 = vmul.f32 %v1377_v10, %v3557_v4  ;;  %v1392_v59 = vmul.f32 %v1376_v50, %v3557_v4 }
 0x25b   :  { %1254 = vmatprep.subr.mxu1 %v3552_v1  ;;  %1311 = vmatprep.subr.mxu0 %v958_v39  ;;  %v1399_v50 = vmul.f32 %v1383_v30, %v3557_v4 }
 0x25c   :  { %1099 = vmatmul.mubr.f32.gmra.mxu0 %v976_v34  ;;  %1255 = vmatpush2.msra.mxu1 %v3553_v2 }
 0x25d   :  { %1312 = vmatpush1.msra.mxu0 %v957_v14  ;;  %1256 = vmatprep.subr.mxu1 %v3554_v62 }
 0x25e   :  { %1313 = vmatprep.subr.mxu0 %v954_v63  ;;  %1257 = vmatpush2.msra.mxu1 %v3555_v44  ;;  %v1389_v63 = vmul.f32 %v1373_v24, %v3557_v4  ;;  %v1388_v44 = vmul.f32 %v1372_v48, %v3557_v4 }
 0x25f   :  { %1314 = vmatpush1.msra.mxu0 %v953_v7  ;;  %1259 = vmatmul.mubr.f32.vlgmr.msra.gmra.mxu1 %v3135_v25 }
 0x260   :  { %1347 = vmatprep.mubr.f32.mxu0 %v3514_v54  ;;  %1264 = vmatprep.mubr.f32.mxu1 %v3138_v45 }
 0x261   :  { %1645 = vmatmul.mubr.msk.f32.vlgmr.msra.gmra.mxu0 %vm1003_vm10, %v3556_v36 }
 0x262   :  { %1353 = vmatprep.mubr.f32.mxu0 %v3514_v54  ;;  %v3216_v31 = vpop.permute.xlu1 %995 }
 0x263   :  { %1265 = vmatmul.mubr.f32.gmra.mxu1 %v3156_v56  ;;  %v3218_v11 = vpop.permute.xlu0 %1000 }
 0x264   :  { %1270 = vmatprep.mubr.f32.mxu1 %v974_v42 }
 0x265   :  { %1646 = vmatmul.mubr.msk.f32.gmra.mxu0 %vm1003_vm10, %v3091_v29 }
 0x266   :  { %1359 = vmatprep.mubr.f32.mxu0 %v3514_v54  ;;  %v3220_v56 = vpop.permute.xlu1 %990 }
 0x267   :  { %1271 = vmatmul.mubr.f32.gmra.mxu1 %v973_v15  ;;  %v3224_v41 = vpop.permute.xlu0 %985 }
 0x268   :  { %1276 = vmatprep.mubr.f32.mxu1 %v977_v26 }
 0x269   :  { %1647 = vmatmul.mubr.msk.f32.gmra.mxu0 %vm1003_vm10, %v3161_v13 }
 0x26a   :  { %1365 = vmatprep.mubr.f32.mxu0 %v3514_v54 }
 0x26b   :  { %1277 = vmatmul.mubr.f32.gmra.mxu1 %v976_v34 }
 0x26c   :  { %1581 = vmatprep.mubr.f32.mxu1 %v3514_v54 }
 0x26d   :  { %1648 = vmatmul.mubr.msk.f32.gmra.mxu0 %vm1003_vm10, %v978_v61 }
 0x26e   :  { %1510 = vmatprep.mubr.f32.mxu0 %v3514_v54 }
 0x2da   :  { %v1171_v0 = vpop.f32.mrf.mxu1 }
 0x2dc   :  { %v1173_v25 = vpop.f32.mrf.mxu1 }
 0x304   :  { %v1177_v29 = vpop.f32.mrf.mxu1 }
 0x306   :  { %v1179_v40 = vpop.f32.mrf.mxu1 }
 0x308   :  { %v1183_v37 = vpop.f32.mrf.mxu1 }
 0x30a   :  { %v1185_v38 = vpop.f32.mrf.mxu1 }
 0x30f   :  { %v1082_v18 = vpop.f32.mrf.mxu0 }
 0x310   :  { %v1083_v57 = vadd.f32 %v1082_v18, %v3224_v41 }
 0x311   :  { %v1084_v45 = vpop.f32.mrf.mxu0 }
 0x312   :  { %v1189_v43 = vpop.f32.mrf.mxu1  ;;  %v1085_v9 = vadd.f32 %v1084_v45, %v3224_v41  ;;  %v1172_v2 = vadd.f32 %v1171_v0, %v1083_v57  ;;  %v1378_v57 = vld [vmem:[#allocation6 + $0x30] sm:$0xff] }
 0x313   :  { %v1088_v6 = vpop.f32.mrf.mxu0 }
 0x314   :  { %v1089_v42 = vadd.f32 %v1088_v6, %v3220_v56  ;;  %v1191_v55 = vpop.f32.mrf.mxu1  ;;  %v1174_v34 = vadd.f32 %v1173_v25, %v1085_v9  ;;  %v1379_v9 = vld [vmem:[#allocation6 + $0x38] sm:$0xff] }
 0x315   :  { %v1090_v51 = vpop.f32.mrf.mxu0 }
 0x316   :  { %v1091_v17 = vadd.f32 %v1090_v51, %v3220_v56  ;;  %v1178_v52 = vadd.f32 %v1177_v29, %v1089_v42 }
 0x317   :  { %v1094_v8 = vpop.f32.mrf.mxu0 }
 0x318   :  { %v1095_v13 = vadd.f32 %v1094_v8, %v3216_v31  ;;  %v1180_v39 = vadd.f32 %v1179_v40, %v1091_v17  ;;  %v1408_v29 = vadd.f32 %v1392_v59, %v1178_v52  ;;  %v1404_v8 = vadd.f32 %v1388_v44, %v1172_v2  ;;  %v1387_v17 = vld [vmem:[#allocation6 + $0x78] sm:$0xff]  ;;  %v1374_v52 = vld [vmem:[#allocation6 + $0x10] sm:$0xff] }
 0x319   :  { %v1096_v20 = vpop.f32.mrf.mxu0 }
 0x31a   :  { %v1097_v54 = vadd.f32 %v1096_v20, %v3216_v31  ;;  %v1184_v32 = vadd.f32 %v1183_v37, %v1095_v13  ;;  %v1409_v18 = vadd.f32 %v1393_v27, %v1180_v39  ;;  %v1405_v37 = vadd.f32 %v1389_v63, %v1174_v34  ;;  %v1386_v13 = vld [vmem:[#allocation6 + $0x70] sm:$0xff] }
 0x31b   :  { %v1420_v42 = vmax.f32 %v1404_v8, 0.0 }
 0x31c   :  { %v1100_v23 = vpop.f32.mrf.mxu0  ;;  %v1186_v21 = vadd.f32 %v1185_v38, %v1097_v54  ;;  %v1412_v7 = vadd.f32 %v1396_v60, %v1184_v32  ;;  %v1425_v0 = vmax.f32 %v1409_v18, 0.0 }
 0x31d   :  { %v1101_v19 = vadd.f32 %v1100_v23, %v3218_v11  ;;  %v1421_v23 = vmax.f32 %v1405_v37, 0.0 }
 0x31e   :  { %v1102_v15 = vpop.f32.mrf.mxu0  ;;  %v1413_v1 = vadd.f32 %v1397_v47, %v1186_v21  ;;  %v1428_v51 = vmax.f32 %v1412_v7, 0.0 }
 0x31f   :  { %v1190_v61 = vadd.f32 %v1189_v43, %v1101_v19  ;;  %v1103_v46 = vadd.f32 %v1102_v15, %v3218_v11  ;;  %v3236_v33 = vpop.f32.mrf.mxu1  ;;  %v1424_v43 = vmax.f32 %v1408_v29, 0.0  ;;  %v1382_v15 = vld [vmem:[#allocation6 + $0x50] sm:$0xff] }
 0x320   :  { %v1429_v25 = vmax.f32 %v1413_v1, 0.0  ;;  %v1398_v48 = vmul.f32 %v1382_v15, %v3557_v4 }
 0x321   :  { %v1192_v28 = vadd.f32 %v1191_v55, %v1103_v46  ;;  %v3238_v26 = vpop.f32.mrf.mxu0  ;;  %v1416_v14 = vadd.f32 %v1400_v53, %v1190_v61  ;;  %v1262_v49 = vpop.f32.mrf.mxu1  ;;  %v1436_v55 = vld [vmem:[%s3280_s7] sm:$0xf]  ;;  %v1403_v61 = vmul.f32 %v1387_v17, %v3557_v4  ;;  %s1755_s7 = smov [#allocation8]  }
 0x322   :  { %v1263_v46 = vadd.f32 %v1262_v49, %v3224_v41  ;;  %s1615_s25 = sshll.u32 %s1755_s7, 4  ;;  %s1616_s25 = int_to_ptr.vmem [resolvable:$true] %s1615_s25 }
 0x323   :  { %v3242_v16 = vpop.f32.mrf.mxu0  ;;  %v1417_v5 = vadd.f32 %v1401_v3, %v1192_v28  ;;  %v1266_v62 = vpop.f32.mrf.mxu1  ;;  %v1432_v40 = vmax.f32 %v1416_v14, 0.0  ;;  %v1375_v28 = vld [vmem:[#allocation6 + $0x18] sm:$0xff]  ;;  %v1395_v14 = vmul.f32 %v1379_v9, %v3557_v4  ;;  %s1713_s26 = scalar_lea.vmem %s1616_s25, 256  ;;  %p1718_p11 = scmp.lt.s32.totalorder %s1616_s25, %s1616_s25 }
 0x324   :  { %v1267_v10 = vadd.f32 %v1266_v62, %v3220_v56  ;;  %v1391_v63 = vmul.f32 %v1375_v28, %v3557_v4  ;;  %p1714_p10 = scmp.ne.s32.totalorder %s1616_s25, %s1713_s26  ;;  %p1719_p12 = scmp.lt.s32.totalorder %s1713_s26, %s1713_s26 }
 0x325   :  { %v1355_v35 = vpop.f32.mrf.mxu0  ;;  %v1433_v36 = vmax.f32 %v1417_v5, 0.0  ;;  %v1268_v45 = vpop.f32.mrf.mxu1  ;;  %v1394_v5 = vmul.f32 %v1378_v57, %v3557_v4 }
 0x326   :  { %v1269_v53 = vadd.f32 %v1268_v45, %v3220_v56  ;;  %v1261_v56 = vadd.f32 %v3236_v33, %v3224_v41  ;;  %v1356_v34 = vadd.f32 %v1355_v35, %v1267_v10  ;;  %v1390_v33 = vmul.f32 %v1374_v52, %v3557_v4  ;;  %p1720_p13 = por %p1719_p12, %p1718_p11 }
 0x327   :  { %v1357_v6 = vpop.f32.mrf.mxu0  ;;  %1470 = vmatprep.subr.mxu0 %v1433_v36  ;;  %v1272_v38 = vpop.f32.mrf.mxu1 }
 0x328   :  { %1471 = vmatpush1.msra.mxu0 %v1432_v40  ;;  %v1273_v22 = vadd.f32 %v1272_v38, %v3216_v31  ;;  %v1358_v59 = vadd.f32 %v1357_v6, %v1269_v53  ;;  %v1350_v41 = vadd.f32 %v3238_v26, %v1261_v56  ;;  %v1410_v18 = vadd.f32 %v1394_v5, %v1356_v34  ;;  %p1721_p0 = pnand %p1720_p13, %p1714_p10 }
 0x329   :  { %v1361_v20 = vpop.f32.mrf.mxu0  ;;  %1472 = vmatprep.subr.mxu0 %v1429_v25  ;;  %v1274_v54 = vpop.f32.mrf.mxu1 }
 0x32a   :  { %1473 = vmatpush1.msra.mxu0 %v1428_v51  ;;  %v1275_v12 = vadd.f32 %v1274_v54, %v3216_v31  ;;  %v1402_v31 = vmul.f32 %v1386_v13, %v3557_v4  ;;  %v1362_v27 = vadd.f32 %v1361_v20, %v1273_v22  ;;  %v1411_v44 = vadd.f32 %v1395_v14, %v1358_v59  ;;  %v1441_v4 = vpop.permute.xlu1 %1440 }
 0x32b   :  { %v1363_v58 = vpop.f32.mrf.mxu0  ;;  %1474 = vmatprep.subr.mxu0 %v1425_v0  ;;  %v1278_v19 = vpop.f32.mrf.mxu1  ;;  %v1406_v45 = vadd.f32 %v1390_v33, %v1350_v41  ;;  %v1426_v25 = vmax.f32 %v1410_v18, 0.0 }
 0x32c   :  { %1475 = vmatpush1.msra.mxu0 %v1424_v43  ;;  %v1279_v3 = vadd.f32 %v1278_v19, %v3218_v11  ;;  %v1364_v32 = vadd.f32 %v1363_v58, %v1275_v12  ;;  %v1414_v62 = vadd.f32 %v1398_v48, %v1362_v27  ;;  %v1593_v0 = vpop.permute.xlu0 %1592 }
 0x32d   :  { %v1367_v47 = vpop.f32.mrf.mxu0  ;;  %1476 = vmatprep.subr.mxu0 %v1421_v23  ;;  %v1280_v21 = vpop.f32.mrf.mxu1  ;;  %v1422_v26 = vmax.f32 %v1406_v45, 0.0 }
 0x32e   :  { %1477 = vmatpush1.msra.mxu0 %v1420_v42  ;;  %v1368_v60 = vadd.f32 %v1367_v47, %v1279_v3  ;;  %v1281_v24 = vadd.f32 %v1280_v21, %v3218_v11  ;;  %v1352_v11 = vadd.f32 %v3242_v16, %v1263_v46  ;;  %v1415_v2 = vadd.f32 %v1399_v50, %v1364_v32 }
 0x32f   :  { %v1369_v39 = vpop.f32.mrf.mxu0  ;;  %1649 = vmatmul.mubr.msk.f32.vlgmr.msra.gmra.mxu0 %vm1003_vm10, %v1436_v55  ;;  %v1430_v6 = vmax.f32 %v1414_v62, 0.0  ;;  %v1427_v16 = vmax.f32 %v1411_v44, 0.0 }
 0x330   :  { %v1370_v49 = vadd.f32 %v1369_v39, %v1281_v24  ;;  %v1418_v1 = vadd.f32 %v1402_v31, %v1368_v60  ;;  %v1407_v40 = vadd.f32 %v1391_v63, %v1352_v11  ;;  %v1431_v35 = vmax.f32 %v1415_v2, 0.0 }
 0x332   :  { %v1419_v7 = vadd.f32 %v1403_v61, %v1370_v49  ;;  %v1434_v29 = vmax.f32 %v1418_v1, 0.0  ;;  %v1423_v37 = vmax.f32 %v1407_v40, 0.0 }
 0x334   :  { %v1435_v36 = vmax.f32 %v1419_v7, 0.0 }
 0x336   :  { %1541 = vmatprep.subr.mxu1 %v1435_v36 }
 0x337   :  { %1542 = vmatpush1.msra.mxu1 %v1434_v29 }
 0x338   :  { %1543 = vmatprep.subr.mxu1 %v1431_v35 }
 0x339   :  { %1544 = vmatpush1.msra.mxu1 %v1430_v6 }
 0x33a   :  { %1545 = vmatprep.subr.mxu1 %v1427_v16 }
 0x33b   :  { %1546 = vmatpush1.msra.mxu1 %v1426_v25 }
 0x33c   :  { %1547 = vmatprep.subr.mxu1 %v1423_v37 }
 0x33d   :  { %1548 = vmatpush1.msra.mxu1 %v1422_v26 }
 0x33e   :  { %1650 = vmatmul.mubr.msk.f32.vlgmr.msra.gmra.mxu1 %vm1003_vm10, %v1436_v55 }
 0x3ef   :  { %v1512_v51 = vpop.f32.mrf.mxu0 }
 0x3f0   :  { %v1513_v38 = vadd.f32 %v1512_v51, %v1441_v4 }
 0x3f1   :  { %v1514_v8 = vpop.f32.mrf.mxu0 }
 0x3f2   :  { %v1515_v20 = vadd.f32 %v1514_v8, %v1441_v4  ;;  %v1595_v43 = vadd.f32 %v1593_v0, %v1513_v38 }
 0x3f4   :  { %v1596_v54 = vadd.f32 %v1593_v0, %v1515_v20 }
 0x3f6   :  { %v1603_v12 = vcombine.low %v1595_v43, %v1596_v54 }
 0x3f8   :  { %1607 = vst [vmem:[#allocation8] sm:$0xff] %v1603_v12 }
 0x3fe   :  { %v1583_v58 = vpop.f32.mrf.mxu1 }
 0x3ff   :  { %v1584_v30 = vadd.f32 %v1583_v58, %v1441_v4 }
 0x400   :  { %v1585_v13 = vpop.f32.mrf.mxu1 }
 0x401   :  { %v1586_v23 = vadd.f32 %v1585_v13, %v1441_v4  ;;  %v1597_v17 = vadd.f32 %v1593_v0, %v1584_v30 }
 0x403   :  { %v1598_v22 = vadd.f32 %v1593_v0, %v1586_v23 }
 0x405   :  { %v1604_v19 = vcombine.low %v1597_v17, %v1598_v22 }
 0x407   :  { %1608 = vst [vmem:[#allocation8 + $0x8] sm:$0xff] %v1604_v19 }
 0x408   :  { %1724 = shalt.err (!%p1721_p0)
}
 0x409   :  { %1618 = dma.vmem_to_hbm [thread:$0]  %s1616_s25, 256, %s3283_s10, [#allocation5]  }
 0x40a   :  { %1737 = dma.done.wait [#allocation5], 256  }
 0x40b   :  { %1738 = vsyncadd [#allocation5], 4294967040 }
 0x40c   :  { %1622 = vsyncpa [#allocation4], 1 }
 0x40d   :  { %1623 = vsyncpa [#allocation7], 1 }
 0x40e   :  { %1624 = vsyncpa [#allocation5], 1 }

</bundles_post_ra>
